<compile_context>
chip_gen: v6e
topology: v6e:2x2x1
jax: 0.10.0
libtpu: 0.0.40
codegen_flags: <defaults>
</compile_context>

<pallas_src>
import functools

import jax
import jax.numpy as jnp
from jax import lax
from jax.experimental import pallas as pl
from jax.experimental.pallas import tpu as pltpu

EPS = 1e-5      # PyTorch BatchNorm1d default eps
C_PAD = 128     # lane-dense channel padding (one vreg lane width)
ROW_PAD = 256   # node-axis padding granularity (v6e/v7x MXU is 256x256)
TILE_M = 256    # A row-tile streamed HBM -> resident VMEM scratch


# ----------------------------------------------------------------------------
# Pallas kernel: full forward of SymRegLayerXBN_add (layer=3 -> one hidden
# linx layer). Channel dims pre-padded to C_PAD, node dim pre-padded to a
# multiple of ROW_PAD; padded rows/cols of A and x are zero so padded entries
# never contaminate true rows or the batch-norm statistics (true 1/N is baked
# in via `inv_n`).
# ----------------------------------------------------------------------------
def symreg_kernel(x_ref, w1_ref, wx_ref, w2_ref, wct_ref, p_ref, a_hbm,
                  o_ref, a_vmem, h_vmem, sem, *, inv_n, tile_m, n_tiles):
    f32 = jnp.float32
    bf16 = jnp.bfloat16

    def a_copy(t):
        rows = pl.ds(t * tile_m, tile_m)
        return pltpu.make_async_copy(a_hbm.at[rows, :], a_vmem.at[rows, :],
                                     sem.at[t])

    # Kick off every row-tile DMA of A up front; the DMA engine streams later
    # tiles while stage-1 matmuls below consume earlier ones (manual P4-style
    # overlap of the 2*N^2-byte adjacency load with the first gconv).
    for t in range(n_tiles):
        a_copy(t).start()

    p = p_ref[...]                      # [5, C] packed per-channel params (f32)
    g1, b1 = p[0:1], p[1:2]
    g2, b2 = p[2:3], p[3:4]
    bc = p[4:5]

    x_bf = x_ref[...]                   # [N, C] bf16
    w1 = w1_ref[...]                    # [C, C] bf16

    # ---- layer 1 (re-associated): per row-tile (A_t @ x) @ W1, overlapped
    #      with the remaining A DMAs ----
    for t in range(n_tiles):
        a_copy(t).wait()
        rows = pl.ds(t * tile_m, tile_m)
        ax = jnp.dot(a_vmem[rows, :], x_bf, preferred_element_type=f32)
        h_vmem[rows, :] = jnp.dot(ax.astype(bf16), w1,
                                  preferred_element_type=f32)

    def bn(h, g, b):
        # Training-mode batch norm, single pass: sum and sum-of-squares, biased
        # variance; fold rsqrt(var+eps)*gamma into one scale (h*scale + shift).
        # Padded rows are all-zero and inv_n is the true 1/N, so stats are exact.
        s = jnp.sum(h, axis=0, keepdims=True) * inv_n
        sq = jnp.sum(h * h, axis=0, keepdims=True) * inv_n
        scale = lax.rsqrt(sq - s * s + EPS) * g
        return h * scale + (b - s * scale)

    h = jnp.maximum(bn(h_vmem[...], g1, b1), 0.0)

    A = a_vmem[...]                     # fully resident bf16 [N, N] from here on

    # ---- middle layer: linx[0] -> gconv sum -> ReLU ----
    h = jnp.dot(h.astype(bf16), wx_ref[...], preferred_element_type=f32)
    h = jnp.maximum(jnp.dot(A, h.astype(bf16), preferred_element_type=f32), 0.0)

    # ---- lin2 -> gconv sum -> batch_norm2 ----
    h = jnp.dot(h.astype(bf16), w2_ref[...], preferred_element_type=f32)
    h = bn(jnp.dot(A, h.astype(bf16), preferred_element_type=f32), g2, b2)

    # ---- Conv1d(out, out, k=1) == per-node linear (weight pre-transposed) ----
    y = jnp.dot(h.astype(bf16), wct_ref[...], preferred_element_type=f32) + bc
    o_ref[...] = y.astype(o_ref.dtype)


# ----------------------------------------------------------------------------
# Host-side wrapper: padding, packing, dtype casts, pallas_call.
# ----------------------------------------------------------------------------
def _pad2(a, rows, cols):
    out = jnp.zeros((rows, cols), a.dtype)
    return out.at[: a.shape[0], : a.shape[1]].set(a)


def symreg_forward(x, A_sum, w1, wx, w2, g1, b1, g2, b2, wc, bc):
    N, _ = x.shape
    nhid = w1.shape[1]
    out_dim = w2.shape[1]
    C = C_PAD
    n_pad = ((N + ROW_PAD - 1) // ROW_PAD) * ROW_PAD
    tile_m = min(TILE_M, n_pad)
    n_tiles = n_pad // tile_m
    bf16 = jnp.bfloat16
    f32 = jnp.float32

    # Lane-dense channel padding, 256-aligned node padding, conv weight
    # pre-transposed. Padded rows/cols are exactly zero.
    x_pad = _pad2(x, n_pad, C).astype(bf16)
    A_pad = _pad2(A_sum, n_pad, n_pad).astype(bf16)
    w1p = _pad2(w1, C, C).astype(bf16)
    wxp = _pad2(wx, C, C).astype(bf16)
    w2p = _pad2(w2, C, C).astype(bf16)
    wctp = _pad2(wc.T, C, C).astype(bf16)

    # Pack the tiny per-channel parameter vectors into one array (f32 BN math).
    params = jnp.zeros((5, C), f32)
    params = params.at[0, :nhid].set(g1.reshape(-1).astype(f32))
    params = params.at[1, :nhid].set(b1.reshape(-1).astype(f32))
    params = params.at[2, :out_dim].set(g2.reshape(-1).astype(f32))
    params = params.at[3, :out_dim].set(b2.reshape(-1).astype(f32))
    params = params.at[4, :out_dim].set(bc.reshape(-1).astype(f32))

    # VMEM budget: resident A + stage-1 scratch + I/O + live f32 temporaries.
    needed = (2 * n_pad * n_pad              # resident A scratch (bf16)
              + 4 * n_pad * C                # stage-1 h scratch (f32)
              + 2 * n_pad * C                # x input (bf16)
              + 4 * 2 * C * C + 4 * 5 * C    # weights (bf16) + packed params
              + 4 * n_pad * C                # f32 output
              + 8 * 4 * n_pad * C)           # ~8 live [n_pad, C] f32 temporaries
    vmem_limit = int(min(max(needed + (4 << 20), 32 << 20), 64 << 20))

    flops = 2 * (3 * n_pad * n_pad * C + 4 * n_pad * C * C)
    bytes_accessed = (2 * n_pad * n_pad + 2 * n_pad * C + 8 * C * C
                      + 4 * n_pad * C)

    kernel = functools.partial(symreg_kernel, inv_n=1.0 / N, tile_m=tile_m,
                               n_tiles=n_tiles)

    vmem = pl.BlockSpec(memory_space=pltpu.MemorySpace.VMEM)
    hbm = pl.BlockSpec(memory_space=pl.ANY)   # A: raw HBM ref, manual DMA
    y_pad = pl.pallas_call(
        kernel,
        out_shape=jax.ShapeDtypeStruct((n_pad, C), jnp.float32),
        in_specs=[vmem, vmem, vmem, vmem, vmem, vmem, hbm],
        out_specs=vmem,
        scratch_shapes=[
            pltpu.VMEM((n_pad, n_pad), bf16),   # resident A
            pltpu.VMEM((n_pad, C), f32),        # stage-1 activations
            pltpu.SemaphoreType.DMA((n_tiles,)),
        ],
        compiler_params=pltpu.CompilerParams(vmem_limit_bytes=vmem_limit),
        cost_estimate=pl.CostEstimate(flops=int(flops),
                                      transcendentals=2 * C,
                                      bytes_accessed=int(bytes_accessed)),
    )(x_pad, w1p, wxp, w2p, wctp, params, A_pad)
    return y_pad[:N, :out_dim]


# ----------------------------------------------------------------------------
# Glue: dense GCN-normalized adjacency (gcn_norm + 'add' aggregation).
# ----------------------------------------------------------------------------
def gcn_norm_dense(src, dst, weight, num_nodes):
    """A_hat[target, source] so that out = A_hat @ x reproduces PyG 'add' agg."""
    sl = jnp.arange(num_nodes, dtype=src.dtype)
    src = jnp.concatenate([src, sl])
    dst = jnp.concatenate([dst, sl])
    weight = jnp.concatenate([weight, jnp.ones((num_nodes,), jnp.float32)])
    deg = jnp.zeros((num_nodes,), jnp.float32).at[dst].add(weight)
    dinv = jnp.where(deg > 0.0, deg ** -0.5, 0.0)
    norm = dinv[src] * weight * dinv[dst]
    A = jnp.zeros((num_nodes, num_nodes), jnp.float32).at[dst, src].add(norm)
    return A


# ----------------------------------------------------------------------------
# Pure-JAX reference in f32, original op order (sanity check only).
# ----------------------------------------------------------------------------
def reference_forward(x, A, w1, wx, w2, g1, b1, g2, b2, wc, bc):
    def bn(h, g, b):
        m = h.mean(0, keepdims=True)
        v = ((h - m) ** 2).mean(0, keepdims=True)
        return (h - m) / jnp.sqrt(v + EPS) * g + b

    h = A @ (x @ w1)
    h = jnp.maximum(bn(h, g1, b1), 0.0)
    h = jnp.maximum(A @ (h @ wx), 0.0)
    h = A @ (h @ w2)
    h = bn(h, g2, b2)
    return h @ wc.T + bc


if __name__ == "__main__":
    # Small, deterministic problem sizes (layer=3, dropout=False).
    N, E = 16, 40          # nodes, edges
    input_dim, nhid, out_dim = 8, 32, 4

    key = jax.random.PRNGKey(0)
    keys = jax.random.split(key, 12)

    # Node features.
    x = jax.random.normal(keys[0], (N, input_dim), jnp.float32)

    # Random directed edges without self-loops (so add_remaining_self_loops
    # simply appends one self-loop per node, as in gcn_norm).
    src = jax.random.randint(keys[1], (E,), 0, N, jnp.int32)
    off = jax.random.randint(keys[2], (E,), 1, N, jnp.int32)
    dst = (src + off) % N
    in_w = jax.random.uniform(keys[3], (E,), jnp.float32, 0.1, 1.0)
    out_w = jax.random.uniform(keys[4], (E,), jnp.float32, 0.1, 1.0)
    ones_w = jnp.ones((E,), jnp.float32)

    # Dense normalized adjacencies; gconv is linear so sum them once.
    A_sym = gcn_norm_dense(src, dst, ones_w, N)          # edge_index (w=None)
    A_in = gcn_norm_dense(dst, src, in_w, N)             # edge_in (reversed dir)
    A_out = gcn_norm_dense(src, dst, out_w, N)           # edge_out
    A_sum = A_sym + A_in + A_out

    # Parameters (linear weights stored [in, out]; Conv1d k=1 weight [out, in]).
    s = 0.1
    w1 = s * jax.random.normal(keys[5], (input_dim, nhid), jnp.float32)
    wx = s * jax.random.normal(keys[6], (nhid, nhid), jnp.float32)
    w2 = s * jax.random.normal(keys[7], (nhid, out_dim), jnp.float32)
    wc = s * jax.random.normal(keys[8], (out_dim, out_dim), jnp.float32)
    bc = s * jax.random.normal(keys[9], (1, out_dim), jnp.float32)
    # BatchNorm affine params (PyTorch default init: gamma=1, beta=0).
    g1 = jnp.ones((1, nhid), jnp.float32)
    b1 = jnp.zeros((1, nhid), jnp.float32)
    g2 = jnp.ones((1, out_dim), jnp.float32)
    b2 = jnp.zeros((1, out_dim), jnp.float32)

    out = symreg_forward(x, A_sum, w1, wx, w2, g1, b1, g2, b2, wc, bc)
    out = jax.block_until_ready(out)

    ref = reference_forward(x, A_sum, w1, wx, w2, g1, b1, g2, b2, wc, bc)
    assert out.shape == (N, out_dim)
    # bf16 matmul operands + f32 accumulation vs full-f32 reference.
    assert jnp.allclose(out, ref, atol=5e-2, rtol=5e-2), "mismatch vs reference"

    print("KERNEL_OK")
</pallas_src>

<mosaic_0001>
module attributes {stable_mosaic.version = 11 : i64} {
  func.func @symreg_kernel(%arg0: memref<256x128xbf16, #tpu.memory_space<vmem>>, %arg1: memref<128x128xbf16, #tpu.memory_space<vmem>>, %arg2: memref<128x128xbf16, #tpu.memory_space<vmem>>, %arg3: memref<128x128xbf16, #tpu.memory_space<vmem>>, %arg4: memref<128x128xbf16, #tpu.memory_space<vmem>>, %arg5: memref<5x128xf32, #tpu.memory_space<vmem>>, %arg6: memref<256x256xbf16, #tpu.memory_space<any>>, %arg7: memref<256x128xf32, #tpu.memory_space<vmem>>, %arg8: memref<256x256xbf16, #tpu.memory_space<vmem>>, %arg9: memref<256x128xf32, #tpu.memory_space<vmem>>, %arg10: memref<1x!tpu.dma_semaphore, #tpu.memory_space<semaphore_mem>>) attributes {dimension_semantics = [], scalar_prefetch = 0 : i64, scratch_operands = 3 : i64, tpu.core_type = #tpu.core_type<tc>} {
    %c0_i32 = arith.constant 0 : i32
    %c0_i32_0 = arith.constant 0 : i32
    %c0_i32_1 = arith.constant 0 : i32
    %0 = tpu.memref_slice %arg6[%c0_i32_0, %c0_i32_1] : memref<256x256xbf16, #tpu.memory_space<any>> -> memref<256x256xbf16, #tpu.memory_space<any>>
    %c0_i32_2 = arith.constant 0 : i32
    %c0_i32_3 = arith.constant 0 : i32
    %1 = tpu.memref_slice %arg8[%c0_i32_2, %c0_i32_3] : memref<256x256xbf16, #tpu.memory_space<vmem>> -> memref<256x256xbf16, #tpu.memory_space<vmem>>
    %2 = tpu.memref_slice %arg10[%c0_i32] : memref<1x!tpu.dma_semaphore, #tpu.memory_space<semaphore_mem>> -> memref<1x!tpu.dma_semaphore, #tpu.memory_space<semaphore_mem>>
    %3 = tpu.memref_squeeze %2 : memref<1x!tpu.dma_semaphore, #tpu.memory_space<semaphore_mem>> -> memref<!tpu.dma_semaphore, #tpu.memory_space<semaphore_mem>>
    tpu.enqueue_dma source(%0 : memref<256x256xbf16, #tpu.memory_space<any>>) target(%1 : memref<256x256xbf16, #tpu.memory_space<vmem>>) target_semaphore(%3 : memref<!tpu.dma_semaphore, #tpu.memory_space<semaphore_mem>>)
    %c0 = arith.constant 0 : index
    %c0_4 = arith.constant 0 : index
    %4 = vector.load %arg5[%c0, %c0_4] : memref<5x128xf32, #tpu.memory_space<vmem>>, vector<5x128xf32>
    %5 = vector.extract_strided_slice %4 {offsets = [0, 0], sizes = [1, 128], strides = [1, 1]} : vector<5x128xf32> to vector<1x128xf32>
    %6 = vector.extract_strided_slice %4 {offsets = [1, 0], sizes = [1, 128], strides = [1, 1]} : vector<5x128xf32> to vector<1x128xf32>
    %7 = vector.extract_strided_slice %4 {offsets = [2, 0], sizes = [1, 128], strides = [1, 1]} : vector<5x128xf32> to vector<1x128xf32>
    %8 = vector.extract_strided_slice %4 {offsets = [3, 0], sizes = [1, 128], strides = [1, 1]} : vector<5x128xf32> to vector<1x128xf32>
    %9 = vector.extract_strided_slice %4 {offsets = [4, 0], sizes = [1, 128], strides = [1, 1]} : vector<5x128xf32> to vector<1x128xf32>
    %c0_5 = arith.constant 0 : index
    %c0_6 = arith.constant 0 : index
    %10 = vector.load %arg0[%c0_5, %c0_6] : memref<256x128xbf16, #tpu.memory_space<vmem>>, vector<256x128xbf16>
    %c0_7 = arith.constant 0 : index
    %c0_8 = arith.constant 0 : index
    %11 = vector.load %arg1[%c0_7, %c0_8] : memref<128x128xbf16, #tpu.memory_space<vmem>>, vector<128x128xbf16>
    %c0_i32_9 = arith.constant 0 : i32
    %c0_i32_10 = arith.constant 0 : i32
    %c0_i32_11 = arith.constant 0 : i32
    %12 = tpu.memref_slice %arg6[%c0_i32_10, %c0_i32_11] : memref<256x256xbf16, #tpu.memory_space<any>> -> memref<256x256xbf16, #tpu.memory_space<any>>
    %c0_i32_12 = arith.constant 0 : i32
    %c0_i32_13 = arith.constant 0 : i32
    %13 = tpu.memref_slice %arg8[%c0_i32_12, %c0_i32_13] : memref<256x256xbf16, #tpu.memory_space<vmem>> -> memref<256x256xbf16, #tpu.memory_space<vmem>>
    %14 = tpu.memref_slice %arg10[%c0_i32_9] : memref<1x!tpu.dma_semaphore, #tpu.memory_space<semaphore_mem>> -> memref<1x!tpu.dma_semaphore, #tpu.memory_space<semaphore_mem>>
    %15 = tpu.memref_squeeze %14 : memref<1x!tpu.dma_semaphore, #tpu.memory_space<semaphore_mem>> -> memref<!tpu.dma_semaphore, #tpu.memory_space<semaphore_mem>>
    tpu.wait_dma2 semaphore(%15 : memref<!tpu.dma_semaphore, #tpu.memory_space<semaphore_mem>>) src(%12 : memref<256x256xbf16, #tpu.memory_space<any>>) dst(%13 : memref<256x256xbf16, #tpu.memory_space<vmem>>)
    %c0_14 = arith.constant 0 : index
    %c0_15 = arith.constant 0 : index
    %16 = vector.load %arg8[%c0_14, %c0_15] : memref<256x256xbf16, #tpu.memory_space<vmem>>, vector<256x256xbf16>
    %cst = arith.constant dense<0.000000e+00> : vector<256x128xf32>
    %17 = tpu.matmul %16, %10, %cst {dimension_numbers = #tpu.dot_dimension_numbers<[1], [0], [0], [1], [0, 0, 1, 1], [], []>} : vector<256x256xbf16>, vector<256x128xbf16>, vector<256x128xf32> -> vector<256x128xf32>
    %18 = arith.truncf %17 : vector<256x128xf32> to vector<256x128xbf16>
    %cst_16 = arith.constant dense<0.000000e+00> : vector<256x128xf32>
    %19 = tpu.matmul %18, %11, %cst_16 {dimension_numbers = #tpu.dot_dimension_numbers<[1], [0], [0], [1], [0, 0, 1, 1], [], []>} : vector<256x128xbf16>, vector<128x128xbf16>, vector<256x128xf32> -> vector<256x128xf32>
    %c0_17 = arith.constant 0 : index
    %c0_18 = arith.constant 0 : index
    %20 = vector.load %arg9[%c0_17, %c0_18] : memref<256x128xf32, #tpu.memory_space<vmem>>, vector<256x128xf32>
    tpu.vector_store %arg9[%c0_17, %c0_18], %19 {strides = array<i32>} : memref<256x128xf32, #tpu.memory_space<vmem>>, vector<256x128xf32>,
    %c0_19 = arith.constant 0 : index
    %c0_20 = arith.constant 0 : index
    %21 = vector.load %arg9[%c0_19, %c0_20] : memref<256x128xf32, #tpu.memory_space<vmem>>, vector<256x128xf32>
    %cst_21 = arith.constant dense<0.000000e+00> : vector<128xf32>
    %22 = vector.multi_reduction <add>, %21, %cst_21 [0] : vector<256x128xf32> to vector<128xf32>
    %23 = vector.shape_cast %22 : vector<128xf32> to vector<1x128xf32>
    %cst_22 = arith.constant 6.250000e-02 : f32
    %24 = vector.broadcast %cst_22 : f32 to vector<1x128xf32>
    %25 = arith.mulf %23, %24 : vector<1x128xf32>
    %26 = arith.mulf %21, %21 : vector<256x128xf32>
    %cst_23 = arith.constant dense<0.000000e+00> : vector<128xf32>
    %27 = vector.multi_reduction <add>, %26, %cst_23 [0] : vector<256x128xf32> to vector<128xf32>
    %28 = vector.shape_cast %27 : vector<128xf32> to vector<1x128xf32>
    %cst_24 = arith.constant 6.250000e-02 : f32
    %29 = vector.broadcast %cst_24 : f32 to vector<1x128xf32>
    %30 = arith.mulf %28, %29 : vector<1x128xf32>
    %31 = arith.mulf %25, %25 : vector<1x128xf32>
    %32 = arith.subf %30, %31 : vector<1x128xf32>
    %cst_25 = arith.constant 9.99999974E-6 : f32
    %33 = vector.broadcast %cst_25 : f32 to vector<1x128xf32>
    %34 = arith.addf %32, %33 : vector<1x128xf32>
    %35 = math.rsqrt %34 : vector<1x128xf32>
    %36 = arith.mulf %35, %5 : vector<1x128xf32>
    %37 = vector.broadcast %36 : vector<1x128xf32> to vector<256x128xf32>
    %38 = arith.mulf %21, %37 : vector<256x128xf32>
    %39 = arith.mulf %25, %36 : vector<1x128xf32>
    %40 = arith.subf %6, %39 : vector<1x128xf32>
    %41 = vector.broadcast %40 : vector<1x128xf32> to vector<256x128xf32>
    %42 = arith.addf %38, %41 : vector<256x128xf32>
    %cst_26 = arith.constant 0.000000e+00 : f32
    %43 = vector.broadcast %cst_26 : f32 to vector<256x128xf32>
    %44 = arith.maximumf %42, %43 : vector<256x128xf32>
    %c0_27 = arith.constant 0 : index
    %c0_28 = arith.constant 0 : index
    %45 = vector.load %arg8[%c0_27, %c0_28] : memref<256x256xbf16, #tpu.memory_space<vmem>>, vector<256x256xbf16>
    %46 = arith.truncf %44 : vector<256x128xf32> to vector<256x128xbf16>
    %c0_29 = arith.constant 0 : index
    %c0_30 = arith.constant 0 : index
    %47 = vector.load %arg2[%c0_29, %c0_30] : memref<128x128xbf16, #tpu.memory_space<vmem>>, vector<128x128xbf16>
    %cst_31 = arith.constant dense<0.000000e+00> : vector<256x128xf32>
    %48 = tpu.matmul %46, %47, %cst_31 {dimension_numbers = #tpu.dot_dimension_numbers<[1], [0], [0], [1], [0, 0, 1, 1], [], []>} : vector<256x128xbf16>, vector<128x128xbf16>, vector<256x128xf32> -> vector<256x128xf32>
    %49 = arith.truncf %48 : vector<256x128xf32> to vector<256x128xbf16>
    %cst_32 = arith.constant dense<0.000000e+00> : vector<256x128xf32>
    %50 = tpu.matmul %45, %49, %cst_32 {dimension_numbers = #tpu.dot_dimension_numbers<[1], [0], [0], [1], [0, 0, 1, 1], [], []>} : vector<256x256xbf16>, vector<256x128xbf16>, vector<256x128xf32> -> vector<256x128xf32>
    %cst_33 = arith.constant 0.000000e+00 : f32
    %51 = vector.broadcast %cst_33 : f32 to vector<256x128xf32>
    %52 = arith.maximumf %50, %51 : vector<256x128xf32>
    %53 = arith.truncf %52 : vector<256x128xf32> to vector<256x128xbf16>
    %c0_34 = arith.constant 0 : index
    %c0_35 = arith.constant 0 : index
    %54 = vector.load %arg3[%c0_34, %c0_35] : memref<128x128xbf16, #tpu.memory_space<vmem>>, vector<128x128xbf16>
    %cst_36 = arith.constant dense<0.000000e+00> : vector<256x128xf32>
    %55 = tpu.matmul %53, %54, %cst_36 {dimension_numbers = #tpu.dot_dimension_numbers<[1], [0], [0], [1], [0, 0, 1, 1], [], []>} : vector<256x128xbf16>, vector<128x128xbf16>, vector<256x128xf32> -> vector<256x128xf32>
    %56 = arith.truncf %55 : vector<256x128xf32> to vector<256x128xbf16>
    %cst_37 = arith.constant dense<0.000000e+00> : vector<256x128xf32>
    %57 = tpu.matmul %45, %56, %cst_37 {dimension_numbers = #tpu.dot_dimension_numbers<[1], [0], [0], [1], [0, 0, 1, 1], [], []>} : vector<256x256xbf16>, vector<256x128xbf16>, vector<256x128xf32> -> vector<256x128xf32>
    %cst_38 = arith.constant dense<0.000000e+00> : vector<128xf32>
    %58 = vector.multi_reduction <add>, %57, %cst_38 [0] : vector<256x128xf32> to vector<128xf32>
    %59 = vector.shape_cast %58 : vector<128xf32> to vector<1x128xf32>
    %cst_39 = arith.constant 6.250000e-02 : f32
    %60 = vector.broadcast %cst_39 : f32 to vector<1x128xf32>
    %61 = arith.mulf %59, %60 : vector<1x128xf32>
    %62 = arith.mulf %57, %57 : vector<256x128xf32>
    %cst_40 = arith.constant dense<0.000000e+00> : vector<128xf32>
    %63 = vector.multi_reduction <add>, %62, %cst_40 [0] : vector<256x128xf32> to vector<128xf32>
    %64 = vector.shape_cast %63 : vector<128xf32> to vector<1x128xf32>
    %cst_41 = arith.constant 6.250000e-02 : f32
    %65 = vector.broadcast %cst_41 : f32 to vector<1x128xf32>
    %66 = arith.mulf %64, %65 : vector<1x128xf32>
    %67 = arith.mulf %61, %61 : vector<1x128xf32>
    %68 = arith.subf %66, %67 : vector<1x128xf32>
    %cst_42 = arith.constant 9.99999974E-6 : f32
    %69 = vector.broadcast %cst_42 : f32 to vector<1x128xf32>
    %70 = arith.addf %68, %69 : vector<1x128xf32>
    %71 = math.rsqrt %70 : vector<1x128xf32>
    %72 = arith.mulf %71, %7 : vector<1x128xf32>
    %73 = vector.broadcast %72 : vector<1x128xf32> to vector<256x128xf32>
    %74 = arith.mulf %57, %73 : vector<256x128xf32>
    %75 = arith.mulf %61, %72 : vector<1x128xf32>
    %76 = arith.subf %8, %75 : vector<1x128xf32>
    %77 = vector.broadcast %76 : vector<1x128xf32> to vector<256x128xf32>
    %78 = arith.addf %74, %77 : vector<256x128xf32>
    %79 = arith.truncf %78 : vector<256x128xf32> to vector<256x128xbf16>
    %c0_43 = arith.constant 0 : index
    %c0_44 = arith.constant 0 : index
    %80 = vector.load %arg4[%c0_43, %c0_44] : memref<128x128xbf16, #tpu.memory_space<vmem>>, vector<128x128xbf16>
    %cst_45 = arith.constant dense<0.000000e+00> : vector<256x128xf32>
    %81 = tpu.matmul %79, %80, %cst_45 {dimension_numbers = #tpu.dot_dimension_numbers<[1], [0], [0], [1], [0, 0, 1, 1], [], []>} : vector<256x128xbf16>, vector<128x128xbf16>, vector<256x128xf32> -> vector<256x128xf32>
    %82 = vector.broadcast %9 : vector<1x128xf32> to vector<256x128xf32>
    %83 = arith.addf %81, %82 : vector<256x128xf32>
    %c0_46 = arith.constant 0 : index
    %c0_47 = arith.constant 0 : index
    %84 = vector.load %arg7[%c0_46, %c0_47] : memref<256x128xf32, #tpu.memory_space<vmem>>, vector<256x128xf32>
    tpu.vector_store %arg7[%c0_46, %c0_47], %83 {strides = array<i32>} : memref<256x128xf32, #tpu.memory_space<vmem>>, vector<256x128xf32>,
    return
  }
}

</mosaic_0001>

<bundles_post_ra>
// kernel: tpu_custom_call.1
= control target key start
LH: loop header
LB: loop body
LE: loop exit
PB: predicated region body
PF: predicated region fallthrough
CT: control target
= control target key end

     0   :  { %12 = vsyncpa [#allocation6], 0  ;;  %s4613_s0 = inlined_call_operand.hbm [shape: bf16[256,128], index: 0, kind: input, shape index: {}]   ;;  %s4614_s1 = inlined_call_operand.hbm [shape: bf16[128,128], index: 1, kind: input, shape index: {}]   ;;  %s4615_s2 = inlined_call_operand.hbm [shape: bf16[128,128], index: 2, kind: input, shape index: {}]   ;;  %s4616_s3 = inlined_call_operand.hbm [shape: bf16[128,128], index: 3, kind: input, shape index: {}]   ;;  %s4617_s4 = inlined_call_operand.hbm [shape: bf16[128,128], index: 4, kind: input, shape index: {}]   ;;  %s4618_s5 = inlined_call_operand.vmem [shape: f32[5,128], index: 5, kind: input, shape index: {}]   ;;  %s4619_s6 = inlined_call_operand.hbm [shape: bf16[256,256], index: 6, kind: input, shape index: {}]   ;;  %s4620_s7 = inlined_call_operand.hbm [shape: f32[256,128], index: 7, kind: output, shape index: {}]  }
   0x1   :  { %13 = vsyncpa [#allocation9], 0 }
   0x2   :  { %14 = vsyncpa [#allocation12], 0 }
   0x3   :  { %15 = vsyncpa [#allocation7], 0  ;;  %s3692_s24 = smov [#allocation8]   ;;  %s3693_s26 = smov [#allocation11]  }
   0x4   :  { %s33_s25 = sshll.u32 %s3692_s24, 4  ;;  %s57_s27 = sshll.u32 %s3693_s26, 4  ;;  %s34_s25 = int_to_ptr.vmem [resolvable:$true] %s33_s25  ;;  %s58_s27 = int_to_ptr.vmem [resolvable:$true] %s57_s27 }
   0x5   :  { %s3550_s28 = scalar_lea.vmem %s34_s25, 1024  ;;  %p3555_p1 = scmp.lt.s32.totalorder %s34_s25, %s34_s25 }
   0x6   :  { %p3551_p0 = scmp.ne.s32.totalorder %s34_s25, %s3550_s28  ;;  %p3556_p2 = scmp.lt.s32.totalorder %s3550_s28, %s3550_s28 }
   0x8   :  { %p3557_p3 = por %p3556_p2, %p3555_p1 }
   0xa   :  { %p3558_p4 = pnand %p3557_p3, %p3551_p0 }
   0xc   :  { %3561 = shalt.err (!%p3558_p4)
}
   0xd   :  { %s3694_s29 = smov 64   ;;  %s3695_s30 = smov 4  }
   0xe   :  { %39 = dma.hbm_to_vmem [thread:$0]  %s4614_s1, 1024, %s34_s25, [#allocation9], %s3694_s29, %s3694_s29, %s3695_s30  }
   0xf   :  { %s3570_s10 = scalar_lea.vmem %s58_s27, 1024  ;;  %p3575_p6 = scmp.lt.s32.totalorder %s58_s27, %s58_s27 }
  0x10   :  { %p3571_p5 = scmp.ne.s32.totalorder %s58_s27, %s3570_s10  ;;  %p3576_p7 = scmp.lt.s32.totalorder %s3570_s10, %s3570_s10 }
  0x12   :  { %p3577_p8 = por %p3576_p7, %p3575_p6 }
  0x14   :  { %p3578_p9 = pnand %p3577_p8, %p3571_p5 }
  0x16   :  { %3581 = shalt.err (!%p3578_p9)
}
  0x17   :  { %63 = dma.hbm_to_vmem [thread:$0]  %s4616_s3, 1024, %s58_s27, [#allocation12], %s3694_s29, %s3694_s29, %s3695_s30  }
  0x18   :  { %s3696_s13 = smov [#allocation5]   ;;  %s3697_s15 = smov [#allocation10]  }
  0x19   :  { %s21_s14 = sshll.u32 %s3696_s13, 4  ;;  %s45_s16 = sshll.u32 %s3697_s15, 4  ;;  %s22_s14 = int_to_ptr.vmem [resolvable:$true] %s21_s14  ;;  %s46_s16 = int_to_ptr.vmem [resolvable:$true] %s45_s16 }
  0x1a   :  { %s3590_s1 = scalar_lea.vmem %s22_s14, 2048  ;;  %p3595_p11 = scmp.lt.s32.totalorder %s22_s14, %s22_s14 }
  0x1b   :  { %p3591_p10 = scmp.ne.s32.totalorder %s22_s14, %s3590_s1  ;;  %p3596_p12 = scmp.lt.s32.totalorder %s3590_s1, %s3590_s1 }
  0x1d   :  { %p3597_p13 = por %p3596_p12, %p3595_p11 }
  0x1f   :  { %p3598_p0 = pnand %p3597_p13, %p3591_p10 }
  0x21   :  { %3601 = shalt.err (!%p3598_p0)
}
  0x22   :  { %27 = dma.hbm_to_vmem [thread:$0]  %s4613_s0, 2048, %s22_s14, [#allocation6], %s3694_s29, %s3694_s29, %s3695_s30  }
  0x23   :  { %s3610_s3 = scalar_lea.vmem %s46_s16, 1024  ;;  %p3615_p2 = scmp.lt.s32.totalorder %s46_s16, %s46_s16 }
  0x24   :  { %p3611_p1 = scmp.ne.s32.totalorder %s46_s16, %s3610_s3  ;;  %p3616_p3 = scmp.lt.s32.totalorder %s3610_s3, %s3610_s3 }
  0x26   :  { %p3617_p4 = por %p3616_p3, %p3615_p2 }
  0x28   :  { %p3618_p5 = pnand %p3617_p4, %p3611_p1 }
  0x2a   :  { %3621 = shalt.err (!%p3618_p5)
}
  0x2b   :  { %51 = dma.hbm_to_vmem [thread:$0]  %s4615_s2, 1024, %s46_s16, [#allocation9], %s3694_s29, %s3694_s29, %s3695_s30  }
  0x2c   :  { %s3698_s21 = smov [#allocation13]  }
  0x2d   :  { %s69_s22 = sshll.u32 %s3698_s21, 4  ;;  %s70_s22 = int_to_ptr.vmem [resolvable:$true] %s69_s22 }
  0x2e   :  { %s3630_s23 = scalar_lea.vmem %s70_s22, 1024  ;;  %p3635_p7 = scmp.lt.s32.totalorder %s70_s22, %s70_s22 }
  0x2f   :  { %p3631_p6 = scmp.ne.s32.totalorder %s70_s22, %s3630_s23  ;;  %p3636_p8 = scmp.lt.s32.totalorder %s3630_s23, %s3630_s23 }
  0x31   :  { %p3637_p9 = por %p3636_p8, %p3635_p7 }
  0x33   :  { %p3638_p10 = pnand %p3637_p9, %p3631_p6 }
  0x35   :  { %3641 = shalt.err (!%p3638_p10)
}
  0x36   :  { %75 = dma.hbm_to_vmem [thread:$0]  %s4617_s4, 1024, %s70_s22, [#allocation12], %s3694_s29, %s3694_s29, %s3695_s30  }
  0x37   :  { %3682 = dma.done.wait [#allocation6], 2048  }
  0x38   :  { %3683 = vsyncadd [#allocation6], 4294965248 }
  0x39   :  { %3684 = dma.done.wait [#allocation9], 2048  }
  0x3a   :  { %3685 = vsyncadd [#allocation9], 4294965248 }
  0x3b   :  { %3686 = dma.done.wait [#allocation12], 2048  }
  0x3c   :  { %3687 = vsyncadd [#allocation12], 4294965248  ;;  %s3699_s2 = smov [#allocation2]  }
  0x3d   :  { %s101_s25 = sshll.u32 %s3699_s2, 4  ;;  %s102_s25 = int_to_ptr.vmem [resolvable:$true] %s101_s25 }
  0x3e   :  { %s3650_s26 = scalar_lea.vmem %s102_s25, 4096  ;;  %p3655_p12 = scmp.lt.s32.totalorder %s102_s25, %s102_s25 }
  0x3f   :  { %p3651_p11 = scmp.ne.s32.totalorder %s102_s25, %s3650_s26  ;;  %p3656_p13 = scmp.lt.s32.totalorder %s3650_s26, %s3650_s26 }
  0x41   :  { %p3657_p0 = por %p3656_p13, %p3655_p12 }
  0x43   :  { %p3658_p1 = pnand %p3657_p0, %p3651_p11 }
  0x45   :  { %3661 = shalt.err (!%p3658_p1)  }
  0x46   :  { %104 = dma.hbm_to_vmem [thread:$0]  %s4619_s6, 4096, %s102_s25, [#allocation4]  ;;  %v3779_v0 = vld [vmem:[%s4618_s5] sm:$0x1f]  ;;  %v3785_v3 = vld [vmem:[#allocation5 + $0x8] sm:$0xf] }
  0x47   :  { %4630 = vst [vmem:[#allocation24_spill] sm:$0xff] %v3779_v0  ;;  %v3781_v1 = vld [vmem:[#allocation5] sm:$0xf]  ;;  %v3783_v2 = vld [vmem:[#allocation5 + $0x4] sm:$0xf] }
  0x48   :  { %v3787_v4 = vld [vmem:[#allocation5 + $0xc] sm:$0xf]  ;;  %v3789_v5 = vld [vmem:[#allocation5 + $0x10] sm:$0xf]  ;;  %v3791_v6 = vld [vmem:[#allocation5 + $0x14] sm:$0xf] }
  0x49   :  { %v3793_v7 = vld [vmem:[#allocation5 + $0x18] sm:$0xf]  ;;  %v3795_v8 = vld [vmem:[#allocation5 + $0x1c] sm:$0xf]  ;;  %v114_v9 = vld [vmem:[#allocation5 + $0x20] sm:$0xf] }
  0x4a   :  { %v115_v10 = vld [vmem:[#allocation5 + $0x24] sm:$0xf]  ;;  %v116_v11 = vld [vmem:[#allocation5 + $0x28] sm:$0xf]  ;;  %v117_v12 = vld [vmem:[#allocation5 + $0x2c] sm:$0xf] }
  0x4b   :  { %v118_v13 = vld [vmem:[#allocation5 + $0x30] sm:$0xf]  ;;  %v119_v14 = vld [vmem:[#allocation5 + $0x34] sm:$0xf]  ;;  %v120_v15 = vld [vmem:[#allocation5 + $0x38] sm:$0xf] }
  0x4c   :  { %v121_v16 = vld [vmem:[#allocation5 + $0x3c] sm:$0xf]  ;;  %v3797_v17 = vld [vmem:[#allocation5 + $0x40] sm:$0xf]  ;;  %v3799_v18 = vld [vmem:[#allocation5 + $0x44] sm:$0xf] }
  0x4d   :  { %v124_v19 = vld [vmem:[#allocation5 + $0x48] sm:$0xf]  ;;  %v125_v20 = vld [vmem:[#allocation5 + $0x4c] sm:$0xf]  ;;  %v126_v21 = vld [vmem:[#allocation5 + $0x50] sm:$0xf]  ;;  %v2709_v50 = vcombine.low %v120_v15, %v121_v16 }
  0x4e   :  { %v127_v22 = vld [vmem:[#allocation5 + $0x54] sm:$0xf]  ;;  %v128_v23 = vld [vmem:[#allocation5 + $0x58] sm:$0xf]  ;;  %v129_v24 = vld [vmem:[#allocation5 + $0x5c] sm:$0xf] }
  0x4f   :  { %v130_v25 = vld [vmem:[#allocation5 + $0x60] sm:$0xf]  ;;  %v131_v26 = vld [vmem:[#allocation5 + $0x64] sm:$0xf]  ;;  %v132_v27 = vld [vmem:[#allocation5 + $0x68] sm:$0xf] }
  0x50   :  { %v133_v28 = vld [vmem:[#allocation5 + $0x6c] sm:$0xf]  ;;  %v134_v29 = vld [vmem:[#allocation5 + $0x70] sm:$0xf]  ;;  %v135_v30 = vld [vmem:[#allocation5 + $0x74] sm:$0xf] }
  0x51   :  { %v136_v31 = vld [vmem:[#allocation5 + $0x78] sm:$0xf]  ;;  %v137_v32 = vld [vmem:[#allocation5 + $0x7c] sm:$0xf]  ;;  %v3801_v33 = vld [vmem:[#allocation8] sm:$0xf]  ;;  %v2716_v51 = vcombine.low %v134_v29, %v135_v30 }
  0x52   :  { %v3803_v34 = vld [vmem:[#allocation8 + $0x4] sm:$0xf]  ;;  %v3805_v35 = vld [vmem:[#allocation8 + $0x8] sm:$0xf]  ;;  %v3807_v36 = vld [vmem:[#allocation8 + $0xc] sm:$0xf]  ;;  %v2717_v49 = vcombine.low %v136_v31, %v137_v32 }
  0x53   :  { %v3809_v37 = vld [vmem:[#allocation8 + $0x10] sm:$0xf]  ;;  %v3811_v38 = vld [vmem:[#allocation8 + $0x14] sm:$0xf]  ;;  %v3813_v39 = vld [vmem:[#allocation8 + $0x18] sm:$0xf] }
  0x54   :  { %v3815_v40 = vld [vmem:[#allocation8 + $0x1c] sm:$0xf]  ;;  %v146_v41 = vld [vmem:[#allocation8 + $0x20] sm:$0xf]  ;;  %v147_v42 = vld [vmem:[#allocation8 + $0x24] sm:$0xf] }
  0x55   :  { %v148_v43 = vld [vmem:[#allocation8 + $0x28] sm:$0xf]  ;;  %v149_v44 = vld [vmem:[#allocation8 + $0x2c] sm:$0xf]  ;;  %v150_v45 = vld [vmem:[#allocation8 + $0x30] sm:$0xf] }
  0x56   :  { %v151_v46 = vld [vmem:[#allocation8 + $0x34] sm:$0xf]  ;;  %v152_v47 = vld [vmem:[#allocation8 + $0x38] sm:$0xf]  ;;  %v153_v48 = vld [vmem:[#allocation8 + $0x3c] sm:$0xf] }
  0x57   :  { %3688 = dma.done.wait [#allocation4], 4096 }
  0x58   :  { %3689 = vsyncadd [#allocation4], 4294963200  ;;  %2783 = vmatprep.subr.bf16.mxu0 %v2717_v49  ;;  %v2708_v52 = vcombine.low %v118_v13, %v119_v14  ;;  %v2715_v53 = vcombine.low %v132_v27, %v133_v28  ;;  %v2707_v54 = vcombine.low %v116_v11, %v117_v12  ;;  %v2714_v55 = vcombine.low %v130_v25, %v131_v26  ;;  %v3420_v56 = vld [vmem:[#allocation2 + $0x4] ss:$8 sps:$4 sm:$0xff]   ;;  %v3429_v13 = vld [vmem:[#allocation2 + $0x30] ss:$8 sps:$4 sm:$0xff]  }
  0x59   :  { %2784 = vmatpush3.bf16.msra.mxu0 %v2709_v50  ;;  %478 = vmatprep.mubr.bf16.mxu0 %v3420_v56  ;;  %v2706_v57 = vcombine.low %v114_v9, %v115_v10  ;;  %v2713_v58 = vcombine.low %v128_v23, %v129_v24  ;;  %v2705_v59 = vcombine.low %v3793_v7, %v3795_v8  ;;  %v3418_v8 = vld [vmem:[#allocation2] ss:$8 sps:$4 sm:$0xff]   ;;  %v3424_v12 = vld [vmem:[#allocation2 + $0x24] ss:$8 sps:$4 sm:$0xff]   ;;  %v3433_v16 = vld [vmem:[#allocation2 + $0x54] ss:$8 sps:$4 sm:$0xff]  }
  0x5a   :  { %2785 = vmatprep.subr.bf16.mxu0 %v2716_v51  ;;  %v2712_v60 = vcombine.low %v126_v21, %v127_v22  ;;  %v2704_v61 = vcombine.low %v3789_v5, %v3791_v6  ;;  %v2711_v62 = vcombine.low %v124_v19, %v125_v20  ;;  %v2703_v63 = vcombine.low %v3785_v3, %v3787_v4  ;;  %v3421_v5 = vld [vmem:[#allocation2 + $0x14] ss:$8 sps:$4 sm:$0xff]   ;;  %v3423_v4 = vld [vmem:[#allocation2 + $0x10] ss:$8 sps:$4 sm:$0xff]   ;;  %v3430_v14 = vld [vmem:[#allocation2 + $0x44] ss:$8 sps:$4 sm:$0xff]  }
  0x5b   :  { %v2710_v9 = vcombine.low %v3797_v17, %v3799_v18  ;;  %v2725_v10 = vcombine.low %v152_v47, %v153_v48  ;;  %v2724_v11 = vcombine.low %v150_v45, %v151_v46  ;;  %v2702_v7 = vcombine.low %v3781_v1, %v3783_v2  ;;  %v3426_v1 = vld [vmem:[#allocation2 + $0x20] ss:$8 sps:$4 sm:$0xff]   ;;  %v3427_v2 = vld [vmem:[#allocation2 + $0x34] ss:$8 sps:$4 sm:$0xff]   ;;  %v3435_v17 = vld [vmem:[#allocation2 + $0x50] ss:$8 sps:$4 sm:$0xff]  }
  0x5c   :  { %v2723_v6 = vcombine.low %v148_v43, %v149_v44  ;;  %v2722_v3 = vcombine.low %v146_v41, %v147_v42  ;;  %v3432_v15 = vld [vmem:[#allocation2 + $0x40] ss:$8 sps:$4 sm:$0xff]   ;;  %v3436_v18 = vld [vmem:[#allocation2 + $0x64] ss:$8 sps:$4 sm:$0xff]   ;;  %v3439_v20 = vld [vmem:[#allocation2 + $0x74] ss:$8 sps:$4 sm:$0xff]   ;;  %v2721_v25 = vcombine.low %v3813_v39, %v3815_v40  ;;  %v2720_v28 = vcombine.low %v3809_v37, %v3811_v38 }
  0x5d   :  { %2786 = vmatpush3.bf16.msra.mxu0 %v2708_v52  ;;  %3215 = vmatprep.subr.bf16.mxu1 %v2725_v10  ;;  %v3438_v19 = vld [vmem:[#allocation2 + $0x60] ss:$8 sps:$4 sm:$0xff]   ;;  %v3441_v21 = vld [vmem:[#allocation2 + $0x70] ss:$8 sps:$4 sm:$0xff]   ;;  %v3442_v22 = vld [vmem:[#allocation2 + $0x84] ss:$8 sps:$4 sm:$0xff]   ;;  %v2719_v29 = vcombine.low %v3805_v35, %v3807_v36  ;;  %v2718_v32 = vcombine.low %v3801_v33, %v3803_v34 }
  0x5e   :  { %2787 = vmatprep.subr.bf16.mxu0 %v2715_v53  ;;  %3216 = vmatpush3.bf16.msra.mxu1 %v2725_v10  ;;  %v3444_v23 = vld [vmem:[#allocation2 + $0x80] ss:$8 sps:$4 sm:$0xff]   ;;  %v3445_v24 = vld [vmem:[#allocation2 + $0x94] ss:$8 sps:$4 sm:$0xff]   ;;  %v3447_v26 = vld [vmem:[#allocation2 + $0x90] ss:$8 sps:$4 sm:$0xff]  }
  0x5f   :  { %3217 = vmatprep.subr.bf16.mxu1 %v2724_v11  ;;  %v3448_v27 = vld [vmem:[#allocation2 + $0xa4] ss:$8 sps:$4 sm:$0xff]   ;;  %v3450_v30 = vld [vmem:[#allocation2 + $0xa0] ss:$8 sps:$4 sm:$0xff]   ;;  %v3451_v31 = vld [vmem:[#allocation2 + $0xb4] ss:$8 sps:$4 sm:$0xff]  }
  0x60   :  { %v3453_v39 = vld [vmem:[#allocation2 + $0xb0] ss:$8 sps:$4 sm:$0xff]   ;;  %v3454_v37 = vld [vmem:[#allocation2 + $0xc4] ss:$8 sps:$4 sm:$0xff]   ;;  %v3456_v38 = vld [vmem:[#allocation2 + $0xc0] ss:$8 sps:$4 sm:$0xff]  }
  0x61   :  { %2788 = vmatpush3.bf16.msra.mxu0 %v2707_v54  ;;  %v3457_v40 = vld [vmem:[#allocation2 + $0xd4] ss:$8 sps:$4 sm:$0xff]   ;;  %v3459_v35 = vld [vmem:[#allocation2 + $0xd0] ss:$8 sps:$4 sm:$0xff]   ;;  %v3460_v36 = vld [vmem:[#allocation2 + $0xe4] ss:$8 sps:$4 sm:$0xff]  }
  0x62   :  { %2789 = vmatprep.subr.bf16.mxu0 %v2714_v55  ;;  %3218 = vmatpush3.bf16.msra.mxu1 %v2724_v11  ;;  %v3462_v41 = vld [vmem:[#allocation2 + $0xe0] ss:$8 sps:$4 sm:$0xff]   ;;  %v3463_v42 = vld [vmem:[#allocation2 + $0xf4] ss:$8 sps:$4 sm:$0xff]   ;;  %v3465_v33 = vld [vmem:[#allocation2 + $0xf0] ss:$8 sps:$4 sm:$0xff]  }
  0x63   :  { %3219 = vmatprep.subr.bf16.mxu1 %v2723_v6  ;;  %s3700_s5 = smov [#allocation14]  }
  0x64   :  { %s2650_s6 = sshll.u32 %s3700_s5, 4  ;;  %s2651_s6 = int_to_ptr.vmem [resolvable:$true] %s2650_s6 }
  0x65   :  { %2790 = vmatpush3.bf16.msra.mxu0 %v2706_v57  ;;  %s3662_s30 = scalar_lea.vmem %s2651_s6, 4096  ;;  %p3667_p3 = scmp.lt.s32.totalorder %s2651_s6, %s2651_s6 }
  0x66   :  { %2791 = vmatprep.subr.bf16.mxu0 %v2713_v58  ;;  %3220 = vmatpush3.bf16.msra.mxu1 %v2723_v6  ;;  %p3663_p2 = scmp.ne.s32.totalorder %s2651_s6, %s3662_s30  ;;  %p3668_p4 = scmp.lt.s32.totalorder %s3662_s30, %s3662_s30 }
  0x67   :  { %3221 = vmatprep.subr.bf16.mxu1 %v2722_v3 }
  0x68   :  { %p3669_p5 = por %p3668_p4, %p3667_p3 }
  0x69   :  { %2792 = vmatpush3.bf16.msra.mxu0 %v2705_v59 }
  0x6a   :  { %2793 = vmatprep.subr.bf16.mxu0 %v2712_v60  ;;  %3222 = vmatpush3.bf16.msra.mxu1 %v2722_v3  ;;  %p3670_p6 = pnand %p3669_p5, %p3663_p2 }
  0x6b   :  { %3223 = vmatprep.subr.bf16.mxu1 %v2721_v25 }
  0x6d   :  { %2794 = vmatpush3.bf16.msra.mxu0 %v2704_v61 }
  0x6e   :  { %2795 = vmatprep.subr.bf16.mxu0 %v2711_v62  ;;  %3224 = vmatpush3.bf16.msra.mxu1 %v2721_v25 }
  0x6f   :  { %3225 = vmatprep.subr.bf16.mxu1 %v2720_v28 }
  0x71   :  { %2796 = vmatpush3.bf16.msra.mxu0 %v2703_v63 }
  0x72   :  { %2797 = vmatprep.subr.bf16.mxu0 %v2710_v9  ;;  %3226 = vmatpush3.bf16.msra.mxu1 %v2720_v28 }
  0x73   :  { %3227 = vmatprep.subr.bf16.mxu1 %v2719_v29 }
  0x75   :  { %2798 = vmatpush3.bf16.msra.mxu0 %v2702_v7 }
  0x76   :  { %3228 = vmatpush3.bf16.msra.mxu1 %v2719_v29 }
  0x77   :  { %3229 = vmatprep.subr.bf16.mxu1 %v2718_v32 }
  0x78   :  { %479 = vmatmul.mubr.bf16.vlgmr.msra.gmra.mxu0 %v3418_v8 }
  0x79   :  { %486 = vmatprep.mubr.bf16.mxu0 %v3421_v5 }
  0x7a   :  { %3230 = vmatpush3.bf16.msra.mxu1 %v2718_v32 }
  0x80   :  { %487 = vmatmul.mubr.bf16.gmra.mxu0 %v3423_v4 }
  0x81   :  { %494 = vmatprep.mubr.bf16.mxu0 %v3424_v12 }
  0x88   :  { %495 = vmatmul.mubr.bf16.gmra.mxu0 %v3426_v1 }
  0x89   :  { %502 = vmatprep.mubr.bf16.mxu0 %v3427_v2 }
  0x90   :  { %503 = vmatmul.mubr.bf16.gmra.mxu0 %v3429_v13 }
  0x91   :  { %510 = vmatprep.mubr.bf16.mxu0 %v3430_v14 }
  0x98   :  { %511 = vmatmul.mubr.bf16.gmra.mxu0 %v3432_v15 }
  0x99   :  { %518 = vmatprep.mubr.bf16.mxu0 %v3433_v16 }
  0xa0   :  { %519 = vmatmul.mubr.bf16.gmra.mxu0 %v3435_v17 }
  0xa1   :  { %526 = vmatprep.mubr.bf16.mxu0 %v3436_v18 }
  0xa8   :  { %527 = vmatmul.mubr.bf16.gmra.mxu0 %v3438_v19 }
  0xa9   :  { %534 = vmatprep.mubr.bf16.mxu0 %v3439_v20 }
  0xb0   :  { %535 = vmatmul.mubr.bf16.gmra.mxu0 %v3441_v21 }
  0xb1   :  { %542 = vmatprep.mubr.bf16.mxu0 %v3442_v22 }
  0xb8   :  { %543 = vmatmul.mubr.bf16.gmra.mxu0 %v3444_v23 }
  0xb9   :  { %550 = vmatprep.mubr.bf16.mxu0 %v3445_v24 }
  0xc0   :  { %551 = vmatmul.mubr.bf16.gmra.mxu0 %v3447_v26 }
  0xc1   :  { %558 = vmatprep.mubr.bf16.mxu0 %v3448_v27 }
  0xc8   :  { %559 = vmatmul.mubr.bf16.gmra.mxu0 %v3450_v30 }
  0xc9   :  { %566 = vmatprep.mubr.bf16.mxu0 %v3451_v31 }
  0xd0   :  { %567 = vmatmul.mubr.bf16.gmra.mxu0 %v3453_v39 }
  0xd1   :  { %574 = vmatprep.mubr.bf16.mxu0 %v3454_v37 }
  0xd8   :  { %575 = vmatmul.mubr.bf16.gmra.mxu0 %v3456_v38 }
  0xd9   :  { %582 = vmatprep.mubr.bf16.mxu0 %v3457_v40 }
  0xe0   :  { %583 = vmatmul.mubr.bf16.gmra.mxu0 %v3459_v35 }
  0xe1   :  { %590 = vmatprep.mubr.bf16.mxu0 %v3460_v36 }
  0xe8   :  { %591 = vmatmul.mubr.bf16.gmra.mxu0 %v3462_v41 }
  0xe9   :  { %598 = vmatprep.mubr.bf16.mxu0 %v3463_v42 }
  0xf0   :  { %599 = vmatmul.mubr.bf16.gmra.mxu0 %v3465_v33 }
 0x138   :  { %v2799_v34 = vpop.f32.mrf.mxu0 }
 0x13a   :  { %v2800_v43 = vpop.f32.mrf.mxu0 }
 0x13b   :  { %v2801_v46 = vadd.f32 %v2800_v43, %v2799_v34 }
 0x13c   :  { %v2802_v44 = vpop.f32.mrf.mxu0 }
 0x13e   :  { %v2803_v45 = vpop.f32.mrf.mxu0 }
 0x13f   :  { %v2804_v47 = vadd.f32 %v2803_v45, %v2802_v44 }
 0x140   :  { %v2805_v48 = vpop.f32.mrf.mxu0 }
 0x141   :  { %v607_v49 = vpack.c.bf16 %v2804_v47, %v2801_v46 }
 0x142   :  { %v2806_v50 = vpop.f32.mrf.mxu0 }
 0x143   :  { %3231 = vmatprep.mubr.bf16.mxu1 %v607_v49  ;;  %v2807_v53 = vadd.f32 %v2806_v50, %v2805_v48 }
 0x144   :  { %v2808_v51 = vpop.f32.mrf.mxu0 }
 0x146   :  { %v2809_v52 = vpop.f32.mrf.mxu0 }
 0x147   :  { %v2810_v54 = vadd.f32 %v2809_v52, %v2808_v51 }
 0x148   :  { %v2811_v55 = vpop.f32.mrf.mxu0 }
 0x149   :  { %v608_v56 = vpack.c.bf16 %v2810_v54, %v2807_v53 }
 0x14a   :  { %v2812_v57 = vpop.f32.mrf.mxu0 }
 0x14b   :  { %3232 = vmatmul.mubr.bf16.vlgmr.msra.gmra.mxu1 %v608_v56  ;;  %v2813_v60 = vadd.f32 %v2812_v57, %v2811_v55 }
 0x14c   :  { %v2814_v58 = vpop.f32.mrf.mxu0 }
 0x14e   :  { %v2815_v59 = vpop.f32.mrf.mxu0 }
 0x14f   :  { %v2816_v61 = vadd.f32 %v2815_v59, %v2814_v58 }
 0x150   :  { %v2817_v62 = vpop.f32.mrf.mxu0 }
 0x151   :  { %v609_v63 = vpack.c.bf16 %v2816_v61, %v2813_v60 }
 0x152   :  { %v2818_v9 = vpop.f32.mrf.mxu0 }
 0x153   :  { %3235 = vmatprep.mubr.bf16.mxu1 %v609_v63  ;;  %v2819_v7 = vadd.f32 %v2818_v9, %v2817_v62 }
 0x154   :  { %v2820_v10 = vpop.f32.mrf.mxu0 }
 0x156   :  { %v2821_v11 = vpop.f32.mrf.mxu0 }
 0x157   :  { %v2822_v8 = vadd.f32 %v2821_v11, %v2820_v10 }
 0x158   :  { %v2823_v5 = vpop.f32.mrf.mxu0 }
 0x159   :  { %v610_v6 = vpack.c.bf16 %v2822_v8, %v2819_v7 }
 0x15a   :  { %v2824_v3 = vpop.f32.mrf.mxu0 }
 0x15b   :  { %3236 = vmatmul.mubr.bf16.gmra.mxu1 %v610_v6  ;;  %v2825_v1 = vadd.f32 %v2824_v3, %v2823_v5 }
 0x15c   :  { %v2826_v4 = vpop.f32.mrf.mxu0 }
 0x15e   :  { %v2827_v12 = vpop.f32.mrf.mxu0 }
 0x15f   :  { %v2828_v2 = vadd.f32 %v2827_v12, %v2826_v4 }
 0x160   :  { %v2829_v13 = vpop.f32.mrf.mxu0 }
 0x161   :  { %v611_v14 = vpack.c.bf16 %v2828_v2, %v2825_v1 }
 0x162   :  { %v2830_v15 = vpop.f32.mrf.mxu0 }
 0x163   :  { %3239 = vmatprep.mubr.bf16.mxu1 %v611_v14  ;;  %v2831_v18 = vadd.f32 %v2830_v15, %v2829_v13 }
 0x164   :  { %v2832_v16 = vpop.f32.mrf.mxu0 }
 0x166   :  { %v2833_v17 = vpop.f32.mrf.mxu0 }
 0x167   :  { %v2834_v19 = vadd.f32 %v2833_v17, %v2832_v16 }
 0x168   :  { %v2835_v20 = vpop.f32.mrf.mxu0 }
 0x169   :  { %v612_v21 = vpack.c.bf16 %v2834_v19, %v2831_v18 }
 0x16a   :  { %v2836_v22 = vpop.f32.mrf.mxu0 }
 0x16b   :  { %3240 = vmatmul.mubr.bf16.gmra.mxu1 %v612_v21  ;;  %v2837_v25 = vadd.f32 %v2836_v22, %v2835_v20 }
 0x16c   :  { %v2838_v23 = vpop.f32.mrf.mxu0 }
 0x16e   :  { %v2839_v24 = vpop.f32.mrf.mxu0 }
 0x16f   :  { %v2840_v26 = vadd.f32 %v2839_v24, %v2838_v23 }
 0x170   :  { %v2841_v27 = vpop.f32.mrf.mxu0 }
 0x171   :  { %v613_v28 = vpack.c.bf16 %v2840_v26, %v2837_v25 }
 0x172   :  { %v2842_v29 = vpop.f32.mrf.mxu0 }
 0x173   :  { %3243 = vmatprep.mubr.bf16.mxu1 %v613_v28  ;;  %v2843_v32 = vadd.f32 %v2842_v29, %v2841_v27 }
 0x174   :  { %v2844_v30 = vpop.f32.mrf.mxu0 }
 0x176   :  { %v2845_v31 = vpop.f32.mrf.mxu0 }
 0x177   :  { %v2846_v39 = vadd.f32 %v2845_v31, %v2844_v30 }
 0x178   :  { %v2847_v37 = vpop.f32.mrf.mxu0 }
 0x179   :  { %v614_v38 = vpack.c.bf16 %v2846_v39, %v2843_v32  ;;  %v3466_v32 = vld [vmem:[#allocation10 + $0x38] sm:$0xff]  }
 0x17a   :  { %v2848_v40 = vpop.f32.mrf.mxu0  ;;  %3263 = vmatprep.subr.bf16.mxu1 %v3466_v32 }
 0x17b   :  { %3244 = vmatmul.mubr.bf16.gmra.mxu1 %v614_v38  ;;  %v2849_v41 = vadd.f32 %v2848_v40, %v2847_v37  ;;  %v3467_v37 = vld [vmem:[#allocation10 + $0x30] sm:$0xff]   ;;  %v3468_v40 = vld [vmem:[#allocation10 + $0x28] sm:$0xff]  }
 0x17c   :  { %v2850_v35 = vpop.f32.mrf.mxu0  ;;  %3264 = vmatpush3.bf16.msra.mxu1 %v3466_v32 }
 0x17d   :  { %3265 = vmatprep.subr.bf16.mxu1 %v3467_v37 }
 0x17e   :  { %v2851_v36 = vpop.f32.mrf.mxu0 }
 0x17f   :  { %v2852_v42 = vadd.f32 %v2851_v36, %v2850_v35 }
 0x180   :  { %v2853_v33 = vpop.f32.mrf.mxu0  ;;  %3266 = vmatpush3.bf16.msra.mxu1 %v3467_v37 }
 0x181   :  { %v615_v34 = vpack.c.bf16 %v2852_v42, %v2849_v41  ;;  %3267 = vmatprep.subr.bf16.mxu1 %v3468_v40  ;;  %v3469_v41 = vld [vmem:[#allocation10 + $0x20] sm:$0xff]  }
 0x182   :  { %v2854_v43 = vpop.f32.mrf.mxu0 }
 0x183   :  { %3247 = vmatprep.mubr.bf16.mxu1 %v615_v34  ;;  %v2855_v46 = vadd.f32 %v2854_v43, %v2853_v33 }
 0x184   :  { %v2856_v44 = vpop.f32.mrf.mxu0  ;;  %3268 = vmatpush3.bf16.msra.mxu1 %v3468_v40 }
 0x185   :  { %3269 = vmatprep.subr.bf16.mxu1 %v3469_v41 }
 0x186   :  { %v2857_v45 = vpop.f32.mrf.mxu0 }
 0x187   :  { %v2858_v47 = vadd.f32 %v2857_v45, %v2856_v44  ;;  %v3470_v45 = vld [vmem:[#allocation10 + $0x18] sm:$0xff]  }
 0x188   :  { %v2859_v48 = vpop.f32.mrf.mxu0  ;;  %3270 = vmatpush3.bf16.msra.mxu1 %v3469_v41 }
 0x189   :  { %v616_v49 = vpack.c.bf16 %v2858_v47, %v2855_v46  ;;  %3271 = vmatprep.subr.bf16.mxu1 %v3470_v45 }
 0x18a   :  { %v2860_v50 = vpop.f32.mrf.mxu0 }
 0x18b   :  { %3248 = vmatmul.mubr.bf16.gmra.mxu1 %v616_v49  ;;  %v2861_v53 = vadd.f32 %v2860_v50, %v2859_v48  ;;  %v3471_v50 = vld [vmem:[#allocation10 + $0x10] sm:$0xff]  }
 0x18c   :  { %v2862_v51 = vpop.f32.mrf.mxu0  ;;  %3272 = vmatpush3.bf16.msra.mxu1 %v3470_v45 }
 0x18d   :  { %3273 = vmatprep.subr.bf16.mxu1 %v3471_v50 }
 0x18e   :  { %v2863_v52 = vpop.f32.mrf.mxu0 }
 0x18f   :  { %v2864_v54 = vadd.f32 %v2863_v52, %v2862_v51 }
 0x190   :  { %v2865_v55 = vpop.f32.mrf.mxu0  ;;  %3274 = vmatpush3.bf16.msra.mxu1 %v3471_v50 }
 0x191   :  { %v617_v56 = vpack.c.bf16 %v2864_v54, %v2861_v53 }
 0x192   :  { %v2866_v57 = vpop.f32.mrf.mxu0 }
 0x193   :  { %3251 = vmatprep.mubr.bf16.mxu1 %v617_v56  ;;  %v2867_v60 = vadd.f32 %v2866_v57, %v2865_v55 }
 0x194   :  { %v2868_v58 = vpop.f32.mrf.mxu0 }
 0x196   :  { %v2869_v59 = vpop.f32.mrf.mxu0 }
 0x197   :  { %v2870_v61 = vadd.f32 %v2869_v59, %v2868_v58  ;;  %v3472_v58 = vld [vmem:[#allocation10 + $0x8] sm:$0xff]  }
 0x198   :  { %v2871_v62 = vpop.f32.mrf.mxu0  ;;  %3275 = vmatprep.subr.bf16.mxu1 %v3472_v58 }
 0x199   :  { %v618_v63 = vpack.c.bf16 %v2870_v61, %v2867_v60  ;;  %3276 = vmatpush3.bf16.msra.mxu1 %v3472_v58 }
 0x19a   :  { %v2872_v9 = vpop.f32.mrf.mxu0 }
 0x19b   :  { %3252 = vmatmul.mubr.bf16.gmra.mxu1 %v618_v63  ;;  %v2873_v7 = vadd.f32 %v2872_v9, %v2871_v62  ;;  %v3473_v63 = vld [vmem:[#allocation10] sm:$0xff]  }
 0x19c   :  { %v2874_v10 = vpop.f32.mrf.mxu0  ;;  %3277 = vmatprep.subr.bf16.mxu1 %v3473_v63 }
 0x19d   :  { %3278 = vmatpush3.bf16.msra.mxu1 %v3473_v63 }
 0x19e   :  { %v2875_v11 = vpop.f32.mrf.mxu0 }
 0x19f   :  { %v2876_v8 = vadd.f32 %v2875_v11, %v2874_v10 }
 0x1a0   :  { %v2877_v5 = vpop.f32.mrf.mxu0 }
 0x1a1   :  { %v619_v6 = vpack.c.bf16 %v2876_v8, %v2873_v7 }
 0x1a2   :  { %v2878_v3 = vpop.f32.mrf.mxu0 }
 0x1a3   :  { %3255 = vmatprep.mubr.bf16.mxu1 %v619_v6  ;;  %v2879_v1 = vadd.f32 %v2878_v3, %v2877_v5 }
 0x1a4   :  { %v2880_v4 = vpop.f32.mrf.mxu0 }
 0x1a6   :  { %v2881_v12 = vpop.f32.mrf.mxu0 }
 0x1a7   :  { %v2882_v2 = vadd.f32 %v2881_v12, %v2880_v4 }
 0x1a8   :  { %v2883_v13 = vpop.f32.mrf.mxu0 }
 0x1a9   :  { %v620_v14 = vpack.c.bf16 %v2882_v2, %v2879_v1 }
 0x1aa   :  { %v2884_v15 = vpop.f32.mrf.mxu0 }
 0x1ab   :  { %3256 = vmatmul.mubr.bf16.gmra.mxu1 %v620_v14  ;;  %v2885_v18 = vadd.f32 %v2884_v15, %v2883_v13 }
 0x1ac   :  { %v2886_v16 = vpop.f32.mrf.mxu0 }
 0x1ae   :  { %v2887_v17 = vpop.f32.mrf.mxu0 }
 0x1af   :  { %v2888_v19 = vadd.f32 %v2887_v17, %v2886_v16 }
 0x1b0   :  { %v2889_v20 = vpop.f32.mrf.mxu0 }
 0x1b1   :  { %v621_v21 = vpack.c.bf16 %v2888_v19, %v2885_v18 }
 0x1b2   :  { %v2890_v22 = vpop.f32.mrf.mxu0 }
 0x1b3   :  { %3259 = vmatprep.mubr.bf16.mxu1 %v621_v21  ;;  %v2891_v25 = vadd.f32 %v2890_v22, %v2889_v20 }
 0x1b4   :  { %v2892_v23 = vpop.f32.mrf.mxu0 }
 0x1b6   :  { %v2893_v24 = vpop.f32.mrf.mxu0 }
 0x1b7   :  { %v2894_v26 = vadd.f32 %v2893_v24, %v2892_v23 }
 0x1b9   :  { %v622_v27 = vpack.c.bf16 %v2894_v26, %v2891_v25 }
 0x1bb   :  { %3260 = vmatmul.mubr.bf16.gmra.mxu1 %v622_v27 }
 0x20b   :  { %v3835_v28 = vpop.f32.mrf.mxu1 }
 0x20c   :  { %v936_v46 = vmul.f32 %v3835_v28, %v3835_v28 }
 0x20d   :  { %v3837_v29 = vpop.f32.mrf.mxu1 }
 0x20e   :  { %v934_v42 = vmul.f32 %v3837_v29, %v3837_v29 }
 0x20f   :  { %v3839_v30 = vpop.f32.mrf.mxu1 }
 0x210   :  { %v937_v51 = vmul.f32 %v3839_v30, %v3839_v30 }
 0x211   :  { %v3841_v31 = vpop.f32.mrf.mxu1 }
 0x212   :  { %v935_v36 = vmul.f32 %v3841_v31, %v3841_v31  ;;  %v896_v33 = vadd.f32 %v3841_v31, %v3837_v29 }
 0x214   :  { %v966_v43 = vadd.f32 %v935_v36, %v934_v42  ;;  %v897_v47 = vadd.f32 %v3835_v28, %v896_v33 }
 0x216   :  { %v967_v48 = vadd.f32 %v966_v43, %v936_v46  ;;  %v898_v52 = vadd.f32 %v3839_v30, %v897_v47 }
 0x218   :  { %v968_v55 = vadd.f32 %v967_v48, %v937_v51 }
 0x21b   :  { %v3843_v39 = vpop.f32.mrf.mxu1 }
 0x21c   :  { %v940_v9 = vmul.f32 %v3843_v39, %v3843_v39 }
 0x21d   :  { %v3845_v38 = vpop.f32.mrf.mxu1 }
 0x21e   :  { %v938_v53 = vmul.f32 %v3845_v38, %v3845_v38  ;;  %v899_v54 = vadd.f32 %v898_v52, %v3845_v38 }
 0x21f   :  { %v3847_v35 = vpop.f32.mrf.mxu1 }
 0x220   :  { %v969_v59 = vadd.f32 %v968_v55, %v938_v53  ;;  %v941_v8 = vmul.f32 %v3847_v35, %v3847_v35 }
 0x221   :  { %v3855_v34 = vpop.f32.mrf.mxu1 }
 0x222   :  { %v939_v56 = vmul.f32 %v3855_v34, %v3855_v34  ;;  %v900_v60 = vadd.f32 %v899_v54, %v3855_v34 }
 0x224   :  { %v970_v61 = vadd.f32 %v969_v59, %v939_v56  ;;  %v901_v10 = vadd.f32 %v3843_v39, %v900_v60 }
 0x226   :  { %v971_v7 = vadd.f32 %v970_v61, %v940_v9  ;;  %v902_v5 = vadd.f32 %v3847_v35, %v901_v10 }
 0x228   :  { %v972_v12 = vadd.f32 %v971_v7, %v941_v8 }
 0x22b   :  { %v3857_v44 = vpop.f32.mrf.mxu1 }
 0x22c   :  { %v944_v16 = vmul.f32 %v3857_v44, %v3857_v44 }
 0x22d   :  { %v3862_v49 = vpop.f32.mrf.mxu1 }
 0x22e   :  { %v942_v6 = vmul.f32 %v3862_v49, %v3862_v49  ;;  %v903_v4 = vadd.f32 %v902_v5, %v3862_v49 }
 0x22f   :  { %v3872_v57 = vpop.f32.mrf.mxu1 }
 0x230   :  { %v973_v2 = vadd.f32 %v972_v12, %v942_v6  ;;  %v945_v21 = vmul.f32 %v3872_v57, %v3872_v57 }
 0x231   :  { %v3875_v62 = vpop.f32.mrf.mxu1 }
 0x232   :  { %v943_v1 = vmul.f32 %v3875_v62, %v3875_v62  ;;  %v904_v13 = vadd.f32 %v903_v4, %v3875_v62 }
 0x234   :  { %v974_v15 = vadd.f32 %v973_v2, %v943_v1  ;;  %v905_v17 = vadd.f32 %v3857_v44, %v904_v13 }
 0x236   :  { %v975_v19 = vadd.f32 %v974_v15, %v944_v16  ;;  %v906_v22 = vadd.f32 %v3872_v57, %v905_v17 }
 0x238   :  { %v976_v25 = vadd.f32 %v975_v19, %v945_v21 }
 0x23b   :  { %v3880_v11 = vpop.f32.mrf.mxu1 }
 0x23c   :  { %v948_v41 = vmul.f32 %v3880_v11, %v3880_v11 }
 0x23d   :  { %v3887_v3 = vpop.f32.mrf.mxu1 }
 0x23e   :  { %v946_v23 = vmul.f32 %v3887_v3, %v3887_v3  ;;  %v907_v24 = vadd.f32 %v906_v22, %v3887_v3 }
 0x23f   :  { %v3893_v14 = vpop.f32.mrf.mxu1 }
 0x240   :  { %v977_v32 = vadd.f32 %v976_v25, %v946_v23  ;;  %v949_v45 = vmul.f32 %v3893_v14, %v3893_v14 }
 0x241   :  { %v3898_v18 = vpop.f32.mrf.mxu1 }
 0x242   :  { %v947_v26 = vmul.f32 %v3898_v18, %v3898_v18  ;;  %v908_v37 = vadd.f32 %v907_v24, %v3898_v18 }
 0x244   :  { %v978_v40 = vadd.f32 %v977_v32, %v947_v26  ;;  %v909_v42 = vadd.f32 %v3880_v11, %v908_v37 }
 0x246   :  { %v979_v33 = vadd.f32 %v978_v40, %v948_v41  ;;  %v910_v46 = vadd.f32 %v3893_v14, %v909_v42 }
 0x248   :  { %v980_v51 = vadd.f32 %v979_v33, %v949_v45 }
 0x24b   :  { %v3900_v20 = vpop.f32.mrf.mxu1 }
 0x24c   :  { %v952_v59 = vmul.f32 %v3900_v20, %v3900_v20 }
 0x24d   :  { %v3910_v27 = vpop.f32.mrf.mxu1 }
 0x24e   :  { %v950_v47 = vmul.f32 %v3910_v27, %v3910_v27  ;;  %v911_v50 = vadd.f32 %v910_v46, %v3910_v27 }
 0x24f   :  { %v3913_v36 = vpop.f32.mrf.mxu1 }
 0x250   :  { %v981_v54 = vadd.f32 %v980_v51, %v950_v47  ;;  %v953_v9 = vmul.f32 %v3913_v36, %v3913_v36 }
 0x251   :  { %v3918_v43 = vpop.f32.mrf.mxu1 }
 0x252   :  { %v951_v52 = vmul.f32 %v3918_v43, %v3918_v43  ;;  %v912_v55 = vadd.f32 %v911_v50, %v3918_v43 }
 0x254   :  { %v982_v56 = vadd.f32 %v981_v54, %v951_v52  ;;  %v913_v60 = vadd.f32 %v3900_v20, %v912_v55 }
 0x256   :  { %v983_v61 = vadd.f32 %v982_v56, %v952_v59  ;;  %v914_v10 = vadd.f32 %v3913_v36, %v913_v60 }
 0x258   :  { %v984_v5 = vadd.f32 %v983_v61, %v953_v9 }
 0x25b   :  { %v3925_v48 = vpop.f32.mrf.mxu1 }
 0x25c   :  { %v956_v15 = vmul.f32 %v3925_v48, %v3925_v48 }
 0x25d   :  { %v3930_v53 = vpop.f32.mrf.mxu1 }
 0x25e   :  { %v954_v7 = vmul.f32 %v3930_v53, %v3930_v53  ;;  %v915_v8 = vadd.f32 %v914_v10, %v3930_v53 }
 0x25f   :  { %v3933_v58 = vpop.f32.mrf.mxu1 }
 0x260   :  { %v985_v4 = vadd.f32 %v984_v5, %v954_v7  ;;  %v957_v22 = vmul.f32 %v3933_v58, %v3933_v58 }
 0x261   :  { %v3938_v63 = vpop.f32.mrf.mxu1 }
 0x262   :  { %v955_v6 = vmul.f32 %v3938_v63, %v3938_v63  ;;  %v916_v12 = vadd.f32 %v915_v8, %v3938_v63 }
 0x264   :  { %v986_v2 = vadd.f32 %v985_v4, %v955_v6  ;;  %v917_v16 = vadd.f32 %v3925_v48, %v916_v12 }
 0x266   :  { %v987_v19 = vadd.f32 %v986_v2, %v956_v15  ;;  %v918_v23 = vadd.f32 %v3933_v58, %v917_v16 }
 0x268   :  { %v988_v26 = vadd.f32 %v987_v19, %v957_v22 }
 0x26b   :  { %v3949_v1 = vpop.f32.mrf.mxu1 }
 0x26c   :  { %v960_v42 = vmul.f32 %v3949_v1, %v3949_v1 }
 0x26d   :  { %v3951_v13 = vpop.f32.mrf.mxu1 }
 0x26e   :  { %v958_v24 = vmul.f32 %v3951_v13, %v3951_v13  ;;  %v919_v25 = vadd.f32 %v918_v23, %v3951_v13 }
 0x26f   :  { %v3956_v17 = vpop.f32.mrf.mxu1 }
 0x270   :  { %v989_v37 = vadd.f32 %v988_v26, %v958_v24  ;;  %v961_v50 = vmul.f32 %v3956_v17, %v3956_v17 }
 0x271   :  { %v3958_v21 = vpop.f32.mrf.mxu1 }
 0x272   :  { %v959_v32 = vmul.f32 %v3958_v21, %v3958_v21  ;;  %v920_v40 = vadd.f32 %v919_v25, %v3958_v21 }
 0x274   :  { %v990_v41 = vadd.f32 %v989_v37, %v959_v32  ;;  %v921_v33 = vadd.f32 %v3949_v1, %v920_v40 }
 0x276   :  { %v991_v46 = vadd.f32 %v990_v41, %v960_v42  ;;  %v922_v51 = vadd.f32 %v3956_v17, %v921_v33 }
 0x278   :  { %v992_v56 = vadd.f32 %v991_v46, %v961_v50 }
 0x27b   :  { %v3972_v45 = vpop.f32.mrf.mxu1 }
 0x27c   :  { %v964_v10 = vmul.f32 %v3972_v45, %v3972_v45 }
 0x27d   :  { %v3974_v47 = vpop.f32.mrf.mxu1 }
 0x27e   :  { %v962_v52 = vmul.f32 %v3974_v47, %v3974_v47  ;;  %v923_v55 = vadd.f32 %v922_v51, %v3974_v47  ;;  %v1009_v51 = vlaneseq }
 0x27f   :  { %v3981_v54 = vpop.f32.mrf.mxu1 }
 0x280   :  { %v993_v60 = vadd.f32 %v992_v56, %v962_v52  ;;  %v965_v5 = vmul.f32 %v3981_v54, %v3981_v54  ;;  %v3996_v56 = vshrl.u32 %v1009_v51, 7 }
 0x281   :  { %v3984_v59 = vpop.f32.mrf.mxu1 }
 0x282   :  { %v924_v61 = vadd.f32 %v923_v55, %v3984_v59  ;;  %v963_v9 = vmul.f32 %v3984_v59, %v3984_v59  ;;  %4631 = vst [vmem:[#allocation25_spill] sm:$0xff] %v3996_v56 }
 0x284   :  { %v925_v7 = vadd.f32 %v3972_v45, %v924_v61  ;;  %v994_v8 = vadd.f32 %v993_v60, %v963_v9  ;;  %v1011_v61 = vsub.s32 0, %v3996_v56 }
 0x286   :  { %v926_v6 = vadd.f32 %v3981_v54, %v925_v7  ;;  %v995_v4 = vadd.f32 %v994_v8, %v964_v10  ;;  %v1052_v7 = vsub.s32 1, %v3996_v56 }
 0x288   :  { %v927_v12 = vrot.slane %v926_v6, 4  ;;  %v996_v2 = vadd.f32 %v995_v4, %v965_v5 }
 0x28a   :  { %v928_v15 = vadd.f32 %v927_v12, %v926_v6  ;;  %v997_v16 = vrot.slane %v996_v2, 4 }
 0x28c   :  { %v929_v19 = vrot.slane %v928_v15, 2  ;;  %v998_v22 = vadd.f32 %v997_v16, %v996_v2 }
 0x28e   :  { %v930_v23 = vadd.f32 %v929_v19, %v928_v15  ;;  %v999_v24 = vrot.slane %v998_v22, 2 }
 0x290   :  { %v931_v25 = vrot.slane %v930_v23, 1  ;;  %v1000_v26 = vadd.f32 %v999_v24, %v998_v22 }
 0x292   :  { %v932_v32 = vadd.f32 %v931_v25, %v930_v23  ;;  %v1001_v37 = vrot.slane %v1000_v26, 1 }
 0x294   :  { %v933_v40 = vmul.f32 0.0625, %v932_v32  ;;  %v1002_v41 = vadd.f32 %v1001_v37, %v1000_v26 }
 0x296   :  { %v1003_v42 = vmul.f32 0.0625, %v1002_v41  ;;  %v1004_v33 = vmul.f32 %v933_v40, %v933_v40 }
 0x298   :  { %v1005_v46 = vsub.f32 %v1003_v42, %v1004_v33 }
 0x29a   :  { %v1006_v50 = vadd.f32 1e-05, %v1005_v46 }
 0x29c   :  { %3538 = vrsqrt.f32 %v1006_v50 }
 0x2a9   :  { %v3539_v52 = vpop.eup %3538 }
 0x2aa   :  { %v1008_v55 = vmul.f32 %v3539_v52, %v3779_v0 }
 0x2ac   :  { %v1045_v60 = vmul.f32 %v1008_v55, %v933_v40  ;;  %v4001_v8 = vrot.slane %v1008_v55, %v1011_v61 }
 0x2ae   :  { %v1047_v9 = vrot.slane %v1045_v60, 7  ;;  %v1015_v6 = vmul.f32 %v3835_v28, %v4001_v8  ;;  %v1013_v4 = vmul.f32 %v4001_v8, %v3837_v29  ;;  %v1016_v12 = vmul.f32 %v3839_v30, %v4001_v8 }
 0x2af   :  { %v1017_v15 = vmul.f32 %v4001_v8, %v3845_v38  ;;  %v1014_v22 = vmul.f32 %v4001_v8, %v3841_v31  ;;  %v1018_v28 = vmul.f32 %v4001_v8, %v3855_v34  ;;  %v1019_v40 = vmul.f32 %v3843_v39, %v4001_v8 }
 0x2b0   :  { %v1049_v10 = vsub.f32 %v3779_v0, %v1047_v9  ;;  %v1020_v31 = vmul.f32 %v3847_v35, %v4001_v8  ;;  %v1021_v34 = vmul.f32 %v4001_v8, %v3862_v49  ;;  %v1022_v42 = vmul.f32 %v4001_v8, %v3875_v62 }
 0x2b1   :  { %v1043_v46 = vmul.f32 %v3972_v45, %v4001_v8  ;;  %v1044_v39 = vmul.f32 %v3981_v54, %v4001_v8  ;;  %v1024_v54 = vmul.f32 %v3872_v57, %v4001_v8 }
 0x2b2   :  { %v4003_v5 = vrot.slane %v1049_v10, %v1052_v7  ;;  %v1023_v10 = vmul.f32 %v3857_v44, %v4001_v8  ;;  %v1025_v7 = vmul.f32 %v4001_v8, %v3887_v3 }
 0x2b4   :  { %v1056_v2 = vadd.f32 %v4003_v5, %v1015_v6  ;;  %v1054_v16 = vadd.f32 %v4003_v5, %v1013_v4  ;;  %v1057_v19 = vadd.f32 %v4003_v5, %v1016_v12  ;;  %v1058_v29 = vadd.f32 %v4003_v5, %v1017_v15 }
 0x2b5   :  { %v1055_v30 = vadd.f32 %v4003_v5, %v1014_v22  ;;  %v1059_v26 = vadd.f32 %v4003_v5, %v1018_v28  ;;  %v1060_v50 = vadd.f32 %v4003_v5, %v1019_v40  ;;  %v1061_v51 = vadd.f32 %v4003_v5, %v1020_v31 }
 0x2b6   :  { %v1088_v23 = vmax.f32 %v1056_v2, 0.0  ;;  %v1089_v24 = vmax.f32 %v1057_v19, 0.0  ;;  %v1086_v25 = vmax.f32 %v1054_v16, 0.0  ;;  %v1090_v32 = vmax.f32 %v1058_v29, 0.0 }
 0x2b7   :  { %v1087_v38 = vmax.f32 %v1055_v30, 0.0  ;;  %v1091_v37 = vmax.f32 %v1059_v26, 0.0  ;;  %v1062_v35 = vadd.f32 %v4003_v5, %v1021_v34  ;;  %v1063_v49 = vadd.f32 %v4003_v5, %v1022_v42 }
 0x2b8   :  { %v1151_v41 = vpack.c.bf16 %v1089_v24, %v1088_v23  ;;  %v1084_v62 = vadd.f32 %v4003_v5, %v1043_v46  ;;  %v1085_v55 = vadd.f32 %v4003_v5, %v1044_v39  ;;  %v1092_v45 = vmax.f32 %v1060_v50, 0.0 }
 0x2b9   :  { %v1150_v33 = vpack.c.bf16 %v1087_v38, %v1086_v25  ;;  %v1152_v52 = vpack.c.bf16 %v1091_v37, %v1090_v32  ;;  %v1093_v60 = vmax.f32 %v1061_v51, 0.0  ;;  %v1094_v61 = vmax.f32 %v1062_v35, 0.0 }
 0x2ba   :  { %v1095_v9 = vmax.f32 %v1063_v49, 0.0  ;;  %v1026_v6 = vmul.f32 %v4001_v8, %v3898_v18  ;;  %v1116_v4 = vmax.f32 %v1084_v62, 0.0  ;;  %v1117_v12 = vmax.f32 %v1085_v55, 0.0 }
 0x2bb   :  { %3279 = vmatprep.mubr.bf16.mxu1 %v1150_v33  ;;  %v1064_v2 = vadd.f32 %v4003_v5, %v1023_v10  ;;  %v1065_v15 = vadd.f32 %v4003_v5, %v1024_v54  ;;  %v1153_v16 = vpack.c.bf16 %v1093_v60, %v1092_v45  ;;  %v1066_v19 = vadd.f32 %v4003_v5, %v1025_v7 }
 0x2bc   :  { %3280 = vmatmul.mubr.bf16.vlgmr.msra.gmra.mxu1 %v1151_v41  ;;  %v1154_v22 = vpack.c.bf16 %v1095_v9, %v1094_v61  ;;  %v1067_v44 = vadd.f32 %v4003_v5, %v1026_v6  ;;  %v4053_v28 = vpack.c.bf16 %v1117_v12, %v1116_v4  ;;  %v1027_v23 = vmul.f32 %v3880_v11, %v4001_v8 }
 0x2bd   :  { %3283 = vmatprep.mubr.bf16.mxu1 %v1152_v52  ;;  %v1096_v57 = vmax.f32 %v1064_v2, 0.0  ;;  %v1097_v3 = vmax.f32 %v1065_v15, 0.0  ;;  %v1098_v29 = vmax.f32 %v1066_v19, 0.0  ;;  %v1028_v24 = vmul.f32 %v3893_v14, %v4001_v8 }
 0x2be   :  { %v1099_v18 = vmax.f32 %v1067_v44, 0.0  ;;  %v1029_v30 = vmul.f32 %v4001_v8, %v3910_v27  ;;  %v1030_v25 = vmul.f32 %v4001_v8, %v3918_v43  ;;  %v1068_v26 = vadd.f32 %v4003_v5, %v1027_v23 }
 0x2bf   :  { %v1069_v38 = vadd.f32 %v4003_v5, %v1028_v24  ;;  %v1155_v32 = vpack.c.bf16 %v1097_v3, %v1096_v57  ;;  %v1031_v27 = vmul.f32 %v3900_v20, %v4001_v8  ;;  %v1032_v43 = vmul.f32 %v3913_v36, %v4001_v8 }
 0x2c0   :  { %v1070_v37 = vadd.f32 %v4003_v5, %v1029_v30  ;;  %v1156_v40 = vpack.c.bf16 %v1099_v18, %v1098_v29  ;;  %v1071_v31 = vadd.f32 %v4003_v5, %v1030_v25  ;;  %v1100_v11 = vmax.f32 %v1068_v26, 0.0 }
 0x2c1   :  { %v1101_v14 = vmax.f32 %v1069_v38, 0.0  ;;  %v1033_v42 = vmul.f32 %v4001_v8, %v3930_v53  ;;  %v1034_v33 = vmul.f32 %v4001_v8, %v3938_v63  ;;  %v1072_v46 = vadd.f32 %v4003_v5, %v1031_v27 }
 0x2c2   :  { %v1102_v41 = vmax.f32 %v1070_v37, 0.0  ;;  %v1103_v34 = vmax.f32 %v1071_v31, 0.0  ;;  %v1073_v50 = vadd.f32 %v4003_v5, %v1032_v43  ;;  %v1035_v53 = vmul.f32 %v3925_v48, %v4001_v8 }
 0x2c3   :  { %v1157_v51 = vpack.c.bf16 %v1101_v14, %v1100_v11  ;;  %v1074_v39 = vadd.f32 %v4003_v5, %v1033_v42  ;;  %v1075_v52 = vadd.f32 %v4003_v5, %v1034_v33  ;;  %v1104_v20 = vmax.f32 %v1072_v46, 0.0 }
 0x2c4   :  { %3284 = vmatmul.mubr.bf16.gmra.mxu1 %v1153_v16  ;;  %v1158_v35 = vpack.c.bf16 %v1103_v34, %v1102_v41  ;;  %v1105_v36 = vmax.f32 %v1073_v50, 0.0  ;;  %v1036_v63 = vmul.f32 %v3933_v58, %v4001_v8  ;;  %v1037_v55 = vmul.f32 %v4001_v8, %v3951_v13 }
 0x2c5   :  { %3287 = vmatprep.mubr.bf16.mxu1 %v1154_v22  ;;  %v1106_v49 = vmax.f32 %v1074_v39, 0.0  ;;  %v1107_v62 = vmax.f32 %v1075_v52, 0.0  ;;  %v1038_v45 = vmul.f32 %v4001_v8, %v3958_v21  ;;  %v1076_v60 = vadd.f32 %v4003_v5, %v1035_v53 }
 0x2c6   :  { %v1077_v61 = vadd.f32 %v4003_v5, %v1036_v63  ;;  %v1159_v9 = vpack.c.bf16 %v1105_v36, %v1104_v20  ;;  %v1078_v10 = vadd.f32 %v4003_v5, %v1037_v55  ;;  %v1039_v13 = vmul.f32 %v3949_v1, %v4001_v8 }
 0x2c7   :  { %v1160_v54 = vpack.c.bf16 %v1107_v62, %v1106_v49  ;;  %v1079_v7 = vadd.f32 %v4003_v5, %v1038_v45  ;;  %v1108_v48 = vmax.f32 %v1076_v60, 0.0  ;;  %v1040_v21 = vmul.f32 %v3956_v17, %v4001_v8 }
 0x2c8   :  { %v1109_v58 = vmax.f32 %v1077_v61, 0.0  ;;  %v1110_v6 = vmax.f32 %v1078_v10, 0.0  ;;  %v1042_v12 = vmul.f32 %v4001_v8, %v3984_v59  ;;  %v1041_v2 = vmul.f32 %v4001_v8, %v3974_v47  ;;  %v4104_v47 = vld [vmem:[#allocation2 + $0x4] ss:$8 sps:$4 sm:$0xff]  }
 0x2c9   :  { %v1111_v4 = vmax.f32 %v1079_v7, 0.0  ;;  %v1080_v15 = vadd.f32 %v4003_v5, %v1039_v13  ;;  %v1081_v16 = vadd.f32 %v4003_v5, %v1040_v21  ;;  %1599 = vmatprep.mubr.bf16.mxu0 %v4104_v47 }
 0x2ca   :  { %v1161_v19 = vpack.c.bf16 %v1109_v58, %v1108_v48  ;;  %v1082_v22 = vadd.f32 %v4003_v5, %v1041_v2  ;;  %v1083_v57 = vadd.f32 %v4003_v5, %v1042_v12  ;;  %v4110_v2 = vld [vmem:[#allocation2] ss:$8 sps:$4 sm:$0xff]  }
 0x2cb   :  { %v1162_v44 = vpack.c.bf16 %v1111_v4, %v1110_v6  ;;  %v1112_v1 = vmax.f32 %v1080_v15, 0.0  ;;  %v1113_v17 = vmax.f32 %v1081_v16, 0.0  ;;  %v4112_v15 = vld [vmem:[#allocation2 + $0x14] ss:$8 sps:$4 sm:$0xff]   ;;  %v4116_v16 = vld [vmem:[#allocation2 + $0x10] ss:$8 sps:$4 sm:$0xff]  }
 0x2cc   :  { %3288 = vmatmul.mubr.bf16.gmra.mxu1 %v1155_v32  ;;  %v1114_v3 = vmax.f32 %v1082_v22, 0.0  ;;  %v1115_v29 = vmax.f32 %v1083_v57, 0.0  ;;  %v4122_v22 = vld [vmem:[#allocation2 + $0x20] ss:$8 sps:$4 sm:$0xff]   ;;  %v4128_v57 = vld [vmem:[#allocation2 + $0x30] ss:$8 sps:$4 sm:$0xff]  }
 0x2cd   :  { %3291 = vmatprep.mubr.bf16.mxu1 %v1156_v40  ;;  %v1163_v59 = vpack.c.bf16 %v1113_v17, %v1112_v1  ;;  %v4130_v1 = vld [vmem:[#allocation2 + $0x44] ss:$8 sps:$4 sm:$0xff]   ;;  %v4134_v17 = vld [vmem:[#allocation2 + $0x40] ss:$8 sps:$4 sm:$0xff]  }
 0x2ce   :  { %v1164_v18 = vpack.c.bf16 %v1115_v29, %v1114_v3  ;;  %v4136_v3 = vld [vmem:[#allocation2 + $0x54] ss:$8 sps:$4 sm:$0xff]   ;;  %v4140_v29 = vld [vmem:[#allocation2 + $0x50] ss:$8 sps:$4 sm:$0xff]  }
 0x2d4   :  { %3292 = vmatmul.mubr.bf16.gmra.mxu1 %v1157_v51 }
 0x2d5   :  { %3295 = vmatprep.mubr.bf16.mxu1 %v1158_v35 }
 0x2dc   :  { %3296 = vmatmul.mubr.bf16.gmra.mxu1 %v1159_v9 }
 0x2dd   :  { %3299 = vmatprep.mubr.bf16.mxu1 %v1160_v54 }
 0x2e4   :  { %3300 = vmatmul.mubr.bf16.gmra.mxu1 %v1161_v19  ;;  %v4118_v19 = vld [vmem:[#allocation2 + $0x24] ss:$8 sps:$4 sm:$0xff]  }
 0x2e5   :  { %3303 = vmatprep.mubr.bf16.mxu1 %v1162_v44  ;;  %v4124_v44 = vld [vmem:[#allocation2 + $0x34] ss:$8 sps:$4 sm:$0xff]  }
 0x2ec   :  { %3304 = vmatmul.mubr.bf16.gmra.mxu1 %v1163_v59  ;;  %v4142_v59 = vld [vmem:[#allocation2 + $0x64] ss:$8 sps:$4 sm:$0xff]  }
 0x2ed   :  { %3307 = vmatprep.mubr.bf16.mxu1 %v1164_v18  ;;  %v4146_v18 = vld [vmem:[#allocation2 + $0x60] ss:$8 sps:$4 sm:$0xff]  }
 0x2f4   :  { %3308 = vmatmul.mubr.bf16.gmra.mxu1 %v4053_v28 }
 0x37c   :  { %v3281_v8 = vpop.f32.mrf.mxu1 }
 0x37e   :  { %v4107_v23 = vpop.f32.mrf.mxu1 }
 0x380   :  { %v3282_v5 = vpop.f32.mrf.mxu1 }
 0x381   :  { %v1392_v24 = vpack.c.bf16 %v3282_v5, %v3281_v8  ;;  %v4148_v8 = vld [vmem:[#allocation2 + $0x74] ss:$8 sps:$4 sm:$0xff]   ;;  %v4154_v5 = vld [vmem:[#allocation2 + $0x84] ss:$8 sps:$4 sm:$0xff]  }
 0x382   :  { %v1267_v30 = vpop.f32.mrf.mxu1 }
 0x383   :  { %v1391_v12 = vpack.c.bf16 %v1267_v30, %v4107_v23  ;;  %v4152_v23 = vld [vmem:[#allocation2 + $0x70] ss:$8 sps:$4 sm:$0xff]   ;;  %v4160_v30 = vld [vmem:[#allocation2 + $0x94] ss:$8 sps:$4 sm:$0xff]  }
 0x384   :  { %v3285_v25 = vpop.f32.mrf.mxu1 }
 0x386   :  { %v1280_v26 = vpop.f32.mrf.mxu1 }
 0x388   :  { %v3286_v38 = vpop.f32.mrf.mxu1 }
 0x389   :  { %v1394_v32 = vpack.c.bf16 %v3286_v38, %v3285_v25  ;;  %v3522_v25 = vld [vmem:[#allocation11 + $0x38] sm:$0xff]  }
 0x38a   :  { %v1283_v37 = vpop.f32.mrf.mxu1  ;;  %3311 = vmatprep.subr.bf16.mxu1 %v3522_v25  ;;  %v4164_v38 = vld [vmem:[#allocation2 + $0x90] ss:$8 sps:$4 sm:$0xff]  }
 0x38b   :  { %v1393_v4 = vpack.c.bf16 %v1283_v37, %v1280_v26  ;;  %3312 = vmatpush3.bf16.msra.mxu1 %v3522_v25  ;;  %v3523_v26 = vld [vmem:[#allocation11 + $0x30] sm:$0xff]   ;;  %v3524_v37 = vld [vmem:[#allocation11 + $0x28] sm:$0xff]  }
 0x38c   :  { %v3289_v40 = vpop.f32.mrf.mxu1  ;;  %3313 = vmatprep.subr.bf16.mxu1 %v3523_v26 }
 0x38e   :  { %v1296_v31 = vpop.f32.mrf.mxu1 }
 0x38f   :  { %3314 = vmatpush3.bf16.msra.mxu1 %v3523_v26 }
 0x390   :  { %v3290_v11 = vpop.f32.mrf.mxu1  ;;  %3315 = vmatprep.subr.bf16.mxu1 %v3524_v37 }
 0x391   :  { %v1396_v54 = vpack.c.bf16 %v3290_v11, %v3289_v40  ;;  %v3525_v40 = vld [vmem:[#allocation11 + $0x20] sm:$0xff]   ;;  %v4172_v11 = vld [vmem:[#allocation2 + $0xb4] ss:$8 sps:$4 sm:$0xff]  }
 0x392   :  { %v1299_v14 = vpop.f32.mrf.mxu1 }
 0x393   :  { %v1395_v48 = vpack.c.bf16 %v1299_v14, %v1296_v31  ;;  %3316 = vmatpush3.bf16.msra.mxu1 %v3524_v37  ;;  %v4170_v31 = vld [vmem:[#allocation2 + $0xa0] ss:$8 sps:$4 sm:$0xff]   ;;  %v3526_v14 = vld [vmem:[#allocation11 + $0x18] sm:$0xff]  }
 0x394   :  { %v3293_v28 = vpop.f32.mrf.mxu1  ;;  %3317 = vmatprep.subr.bf16.mxu1 %v3525_v40 }
 0x396   :  { %v1312_v41 = vpop.f32.mrf.mxu1 }
 0x397   :  { %3318 = vmatpush3.bf16.msra.mxu1 %v3525_v40 }
 0x398   :  { %v3294_v34 = vpop.f32.mrf.mxu1  ;;  %3319 = vmatprep.subr.bf16.mxu1 %v3526_v14 }
 0x399   :  { %v1398_v45 = vpack.c.bf16 %v3294_v34, %v3293_v28  ;;  %v3527_v28 = vld [vmem:[#allocation11 + $0x10] sm:$0xff]   ;;  %v4178_v34 = vld [vmem:[#allocation2 + $0xc4] ss:$8 sps:$4 sm:$0xff]  }
 0x39a   :  { %v1315_v27 = vpop.f32.mrf.mxu1 }
 0x39b   :  { %v1397_v9 = vpack.c.bf16 %v1315_v27, %v1312_v41  ;;  %3320 = vmatpush3.bf16.msra.mxu1 %v3526_v14  ;;  %v4176_v41 = vld [vmem:[#allocation2 + $0xb0] ss:$8 sps:$4 sm:$0xff]   ;;  %v3528_v27 = vld [vmem:[#allocation11 + $0x8] sm:$0xff]  }
 0x39c   :  { %v3297_v43 = vpop.f32.mrf.mxu1  ;;  %3321 = vmatprep.subr.bf16.mxu1 %v3527_v28 }
 0x39e   :  { %v1328_v42 = vpop.f32.mrf.mxu1 }
 0x39f   :  { %3322 = vmatpush3.bf16.msra.mxu1 %v3527_v28 }
 0x3a0   :  { %v3298_v33 = vpop.f32.mrf.mxu1  ;;  %3323 = vmatprep.subr.bf16.mxu1 %v3528_v27 }
 0x3a1   :  { %v1400_v13 = vpack.c.bf16 %v3298_v33, %v3297_v43  ;;  %v3529_v43 = vld [vmem:[#allocation11] sm:$0xff]   ;;  %v4184_v33 = vld [vmem:[#allocation2 + $0xd4] ss:$8 sps:$4 sm:$0xff]  }
 0x3a2   :  { %v1331_v46 = vpop.f32.mrf.mxu1 }
 0x3a3   :  { %v1399_v21 = vpack.c.bf16 %v1331_v46, %v1328_v42  ;;  %3324 = vmatpush3.bf16.msra.mxu1 %v3528_v27  ;;  %v4182_v42 = vld [vmem:[#allocation2 + $0xc0] ss:$8 sps:$4 sm:$0xff]   ;;  %v4188_v46 = vld [vmem:[#allocation2 + $0xd0] ss:$8 sps:$4 sm:$0xff]  }
 0x3a4   :  { %v3301_v50 = vpop.f32.mrf.mxu1  ;;  %3325 = vmatprep.subr.bf16.mxu1 %v3529_v43  ;;  %4632 = vst [vmem:[#allocation26_spill] sm:$0xff] %v4188_v46 }
 0x3a6   :  { %v1344_v51 = vpop.f32.mrf.mxu1 }
 0x3a7   :  { %3326 = vmatpush3.bf16.msra.mxu1 %v3529_v43 }
 0x3a8   :  { %v3302_v39 = vpop.f32.mrf.mxu1 }
 0x3a9   :  { %v1402_v58 = vpack.c.bf16 %v3302_v39, %v3301_v50  ;;  %v4190_v50 = vld [vmem:[#allocation2 + $0xe4] ss:$8 sps:$4 sm:$0xff]   ;;  %v4196_v39 = vld [vmem:[#allocation2 + $0xf4] ss:$8 sps:$4 sm:$0xff]  }
 0x3aa   :  { %v1347_v35 = vpop.f32.mrf.mxu1  ;;  %4633 = vst [vmem:[#allocation27_spill] sm:$0xff] %v4190_v50  ;;  %4635 = vst [vmem:[#allocation29_spill] sm:$0xff] %v4196_v39 }
 0x3ab   :  { %v1401_v6 = vpack.c.bf16 %v1347_v35, %v1344_v51  ;;  %v4194_v51 = vld [vmem:[#allocation2 + $0xe0] ss:$8 sps:$4 sm:$0xff]   ;;  %v4200_v35 = vld [vmem:[#allocation2 + $0xf0] ss:$8 sps:$4 sm:$0xff]  }
 0x3ac   :  { %v3305_v52 = vpop.f32.mrf.mxu1  ;;  %4634 = vst [vmem:[#allocation28_spill] sm:$0xff] %v4194_v51  ;;  %4636 = vst [vmem:[#allocation30_spill] sm:$0xff] %v4200_v35 }
 0x3ae   :  { %v1360_v20 = vpop.f32.mrf.mxu1 }
 0x3b0   :  { %v3306_v36 = vpop.f32.mrf.mxu1 }
 0x3b1   :  { %v1404_v10 = vpack.c.bf16 %v3306_v36, %v3305_v52 }
 0x3b2   :  { %v1363_v49 = vpop.f32.mrf.mxu1 }
 0x3b3   :  { %v1403_v7 = vpack.c.bf16 %v1363_v49, %v1360_v20 }
 0x3b4   :  { %v3309_v62 = vpop.f32.mrf.mxu1 }
 0x3b6   :  { %v1376_v53 = vpop.f32.mrf.mxu1 }
 0x3b8   :  { %v3310_v63 = vpop.f32.mrf.mxu1 }
 0x3b9   :  { %v1406_v55 = vpack.c.bf16 %v3310_v63, %v3309_v62 }
 0x3ba   :  { %v1379_v60 = vpop.f32.mrf.mxu1 }
 0x3bb   :  { %v1405_v61 = vpack.c.bf16 %v1379_v60, %v1376_v53  ;;  %2943 = vmatprep.subr.bf16.mxu0 %v1406_v55 }
 0x3bc   :  { %2944 = vmatpush3.bf16.msra.mxu0 %v1398_v45 }
 0x3bd   :  { %2945 = vmatprep.subr.bf16.mxu0 %v1405_v61 }
 0x3c0   :  { %2946 = vmatpush3.bf16.msra.mxu0 %v1397_v9 }
 0x3c1   :  { %2947 = vmatprep.subr.bf16.mxu0 %v1404_v10 }
 0x3c4   :  { %2948 = vmatpush3.bf16.msra.mxu0 %v1396_v54 }
 0x3c5   :  { %2949 = vmatprep.subr.bf16.mxu0 %v1403_v7 }
 0x3c8   :  { %2950 = vmatpush3.bf16.msra.mxu0 %v1395_v48 }
 0x3c9   :  { %2951 = vmatprep.subr.bf16.mxu0 %v1402_v58 }
 0x3cc   :  { %2952 = vmatpush3.bf16.msra.mxu0 %v1394_v32  ;;  %v4166_v32 = vld [vmem:[#allocation2 + $0xa4] ss:$8 sps:$4 sm:$0xff]  }
 0x3cd   :  { %2953 = vmatprep.subr.bf16.mxu0 %v1401_v6 }
 0x3d0   :  { %2954 = vmatpush3.bf16.msra.mxu0 %v1393_v4 }
 0x3d1   :  { %2955 = vmatprep.subr.bf16.mxu0 %v1400_v13 }
 0x3d4   :  { %2956 = vmatpush3.bf16.msra.mxu0 %v1392_v24  ;;  %v4158_v24 = vld [vmem:[#allocation2 + $0x80] ss:$8 sps:$4 sm:$0xff]  }
 0x3d5   :  { %2957 = vmatprep.subr.bf16.mxu0 %v1399_v21 }
 0x3d8   :  { %2958 = vmatpush3.bf16.msra.mxu0 %v1391_v12 }
 0x3db   :  { %1600 = vmatmul.mubr.bf16.vlgmr.msra.gmra.mxu0 %v4110_v2 }
 0x3dc   :  { %1607 = vmatprep.mubr.bf16.mxu0 %v4112_v15 }
 0x3e3   :  { %1608 = vmatmul.mubr.bf16.gmra.mxu0 %v4116_v16 }
 0x3e4   :  { %1615 = vmatprep.mubr.bf16.mxu0 %v4118_v19 }
 0x3eb   :  { %1616 = vmatmul.mubr.bf16.gmra.mxu0 %v4122_v22 }
 0x3ec   :  { %1623 = vmatprep.mubr.bf16.mxu0 %v4124_v44 }
 0x3f3   :  { %1624 = vmatmul.mubr.bf16.gmra.mxu0 %v4128_v57 }
 0x3f4   :  { %1631 = vmatprep.mubr.bf16.mxu0 %v4130_v1 }
 0x3fb   :  { %1632 = vmatmul.mubr.bf16.gmra.mxu0 %v4134_v17 }
 0x3fc   :  { %1639 = vmatprep.mubr.bf16.mxu0 %v4136_v3 }
 0x403   :  { %1640 = vmatmul.mubr.bf16.gmra.mxu0 %v4140_v29 }
 0x404   :  { %1647 = vmatprep.mubr.bf16.mxu0 %v4142_v59 }
 0x40b   :  { %1648 = vmatmul.mubr.bf16.gmra.mxu0 %v4146_v18 }
 0x40c   :  { %1655 = vmatprep.mubr.bf16.mxu0 %v4148_v8 }
 0x413   :  { %1656 = vmatmul.mubr.bf16.gmra.mxu0 %v4152_v23 }
 0x414   :  { %1663 = vmatprep.mubr.bf16.mxu0 %v4154_v5 }
 0x41b   :  { %1664 = vmatmul.mubr.bf16.gmra.mxu0 %v4158_v24 }
 0x41c   :  { %1671 = vmatprep.mubr.bf16.mxu0 %v4160_v30 }
 0x423   :  { %1672 = vmatmul.mubr.bf16.gmra.mxu0 %v4164_v38 }
 0x424   :  { %1679 = vmatprep.mubr.bf16.mxu0 %v4166_v32 }
 0x42b   :  { %1680 = vmatmul.mubr.bf16.gmra.mxu0 %v4170_v31 }
 0x42c   :  { %1687 = vmatprep.mubr.bf16.mxu0 %v4172_v11 }
 0x433   :  { %1688 = vmatmul.mubr.bf16.gmra.mxu0 %v4176_v41 }
 0x434   :  { %1695 = vmatprep.mubr.bf16.mxu0 %v4178_v34 }
 0x43b   :  { %1696 = vmatmul.mubr.bf16.gmra.mxu0 %v4182_v42 }
 0x43c   :  { %1703 = vmatprep.mubr.bf16.mxu0 %v4184_v33 }
 0x443   :  { %1704 = vmatmul.mubr.bf16.gmra.mxu0 %v4188_v46 }
 0x444   :  { %1711 = vmatprep.mubr.bf16.mxu0 %v4190_v50 }
 0x44b   :  { %1712 = vmatmul.mubr.bf16.gmra.mxu0 %v4194_v51 }
 0x44c   :  { %1719 = vmatprep.mubr.bf16.mxu0 %v4196_v39 }
 0x453   :  { %1720 = vmatmul.mubr.bf16.gmra.mxu0 %v4200_v35 }
 0x49b   :  { %v2959_v52 = vpop.f32.mrf.mxu0 }
 0x49d   :  { %v2960_v20 = vpop.f32.mrf.mxu0 }
 0x49e   :  { %v2961_v49 = vadd.f32 %v2960_v20, %v2959_v52 }
 0x49f   :  { %v2962_v36 = vpop.f32.mrf.mxu0 }
 0x4a0   :  { %v1728_v55 = vmax.f32 %v2961_v49, 0.0 }
 0x4a1   :  { %v2963_v62 = vpop.f32.mrf.mxu0 }
 0x4a2   :  { %v2964_v53 = vadd.f32 %v2963_v62, %v2962_v36 }
 0x4a3   :  { %v2965_v63 = vpop.f32.mrf.mxu0 }
 0x4a4   :  { %v1729_v45 = vmax.f32 %v2964_v53, 0.0 }
 0x4a5   :  { %v2966_v60 = vpop.f32.mrf.mxu0 }
 0x4a6   :  { %v1760_v61 = vpack.c.bf16 %v1729_v45, %v1728_v55  ;;  %v2967_v10 = vadd.f32 %v2966_v60, %v2965_v63 }
 0x4a7   :  { %v2968_v9 = vpop.f32.mrf.mxu0 }
 0x4a8   :  { %3327 = vmatprep.mubr.bf16.mxu1 %v1760_v61  ;;  %v1730_v58 = vmax.f32 %v2967_v10, 0.0 }
 0x4a9   :  { %v2969_v54 = vpop.f32.mrf.mxu0 }
 0x4aa   :  { %v2970_v7 = vadd.f32 %v2969_v54, %v2968_v9 }
 0x4ab   :  { %v2971_v48 = vpop.f32.mrf.mxu0 }
 0x4ac   :  { %v1731_v6 = vmax.f32 %v2970_v7, 0.0 }
 0x4ad   :  { %v2972_v4 = vpop.f32.mrf.mxu0 }
 0x4ae   :  { %v1761_v13 = vpack.c.bf16 %v1731_v6, %v1730_v58  ;;  %v2973_v12 = vadd.f32 %v2972_v4, %v2971_v48 }
 0x4af   :  { %v2974_v21 = vpop.f32.mrf.mxu0 }
 0x4b0   :  { %3328 = vmatmul.mubr.bf16.vlgmr.msra.gmra.mxu1 %v1761_v13  ;;  %v1732_v40 = vmax.f32 %v2973_v12, 0.0 }
 0x4b1   :  { %v2975_v25 = vpop.f32.mrf.mxu0 }
 0x4b2   :  { %v2976_v26 = vadd.f32 %v2975_v25, %v2974_v21 }
 0x4b3   :  { %v2977_v37 = vpop.f32.mrf.mxu0 }
 0x4b4   :  { %v1733_v14 = vmax.f32 %v2976_v26, 0.0 }
 0x4b5   :  { %v2978_v28 = vpop.f32.mrf.mxu0 }
 0x4b6   :  { %v1762_v27 = vpack.c.bf16 %v1733_v14, %v1732_v40  ;;  %v2979_v52 = vadd.f32 %v2978_v28, %v2977_v37 }
 0x4b7   :  { %v2980_v43 = vpop.f32.mrf.mxu0 }
 0x4b8   :  { %3331 = vmatprep.mubr.bf16.mxu1 %v1762_v27  ;;  %v1734_v62 = vmax.f32 %v2979_v52, 0.0 }
 0x4b9   :  { %v2981_v20 = vpop.f32.mrf.mxu0 }
 0x4ba   :  { %v2982_v36 = vadd.f32 %v2981_v20, %v2980_v43 }
 0x4bb   :  { %v2983_v49 = vpop.f32.mrf.mxu0 }
 0x4bc   :  { %v1735_v53 = vmax.f32 %v2982_v36, 0.0 }
 0x4bd   :  { %v2984_v63 = vpop.f32.mrf.mxu0 }
 0x4be   :  { %v1763_v55 = vpack.c.bf16 %v1735_v53, %v1734_v62  ;;  %v2985_v60 = vadd.f32 %v2984_v63, %v2983_v49 }
 0x4bf   :  { %v2986_v45 = vpop.f32.mrf.mxu0 }
 0x4c0   :  { %3332 = vmatmul.mubr.bf16.gmra.mxu1 %v1763_v55  ;;  %v1736_v54 = vmax.f32 %v2985_v60, 0.0 }
 0x4c1   :  { %v2987_v61 = vpop.f32.mrf.mxu0 }
 0x4c2   :  { %v2988_v9 = vadd.f32 %v2987_v61, %v2986_v45 }
 0x4c3   :  { %v2989_v10 = vpop.f32.mrf.mxu0 }
 0x4c4   :  { %v1737_v7 = vmax.f32 %v2988_v9, 0.0 }
 0x4c5   :  { %v2990_v48 = vpop.f32.mrf.mxu0 }
 0x4c6   :  { %v1764_v58 = vpack.c.bf16 %v1737_v7, %v1736_v54  ;;  %v2991_v4 = vadd.f32 %v2990_v48, %v2989_v10 }
 0x4c7   :  { %v2992_v6 = vpop.f32.mrf.mxu0 }
 0x4c8   :  { %3335 = vmatprep.mubr.bf16.mxu1 %v1764_v58  ;;  %v1738_v25 = vmax.f32 %v2991_v4, 0.0 }
 0x4c9   :  { %v2993_v13 = vpop.f32.mrf.mxu0 }
 0x4ca   :  { %v2994_v21 = vadd.f32 %v2993_v13, %v2992_v6 }
 0x4cb   :  { %v2995_v12 = vpop.f32.mrf.mxu0 }
 0x4cc   :  { %v1739_v26 = vmax.f32 %v2994_v21, 0.0 }
 0x4cd   :  { %v2996_v37 = vpop.f32.mrf.mxu0 }
 0x4ce   :  { %v1765_v40 = vpack.c.bf16 %v1739_v26, %v1738_v25  ;;  %v2997_v28 = vadd.f32 %v2996_v37, %v2995_v12 }
 0x4cf   :  { %v2998_v14 = vpop.f32.mrf.mxu0 }
 0x4d0   :  { %3336 = vmatmul.mubr.bf16.gmra.mxu1 %v1765_v40  ;;  %v1740_v20 = vmax.f32 %v2997_v28, 0.0 }
 0x4d1   :  { %v2999_v27 = vpop.f32.mrf.mxu0 }
 0x4d2   :  { %v3000_v43 = vadd.f32 %v2999_v27, %v2998_v14 }
 0x4d3   :  { %v3001_v52 = vpop.f32.mrf.mxu0 }
 0x4d4   :  { %v1741_v36 = vmax.f32 %v3000_v43, 0.0 }
 0x4d5   :  { %v3002_v49 = vpop.f32.mrf.mxu0 }
 0x4d6   :  { %v1766_v62 = vpack.c.bf16 %v1741_v36, %v1740_v20  ;;  %v3003_v63 = vadd.f32 %v3002_v49, %v3001_v52 }
 0x4d7   :  { %v3004_v53 = vpop.f32.mrf.mxu0 }
 0x4d8   :  { %3339 = vmatprep.mubr.bf16.mxu1 %v1766_v62  ;;  %v1742_v61 = vmax.f32 %v3003_v63, 0.0 }
 0x4d9   :  { %v3005_v55 = vpop.f32.mrf.mxu0 }
 0x4da   :  { %v3006_v45 = vadd.f32 %v3005_v55, %v3004_v53 }
 0x4db   :  { %v3007_v60 = vpop.f32.mrf.mxu0 }
 0x4dc   :  { %v1743_v9 = vmax.f32 %v3006_v45, 0.0 }
 0x4dd   :  { %v3008_v10 = vpop.f32.mrf.mxu0 }
 0x4de   :  { %v1767_v54 = vpack.c.bf16 %v1743_v9, %v1742_v61  ;;  %v3009_v48 = vadd.f32 %v3008_v10, %v3007_v60 }
 0x4df   :  { %v3010_v7 = vpop.f32.mrf.mxu0 }
 0x4e0   :  { %3340 = vmatmul.mubr.bf16.gmra.mxu1 %v1767_v54  ;;  %v1744_v13 = vmax.f32 %v3009_v48, 0.0 }
 0x4e1   :  { %v3011_v58 = vpop.f32.mrf.mxu0 }
 0x4e2   :  { %v3012_v6 = vadd.f32 %v3011_v58, %v3010_v7 }
 0x4e3   :  { %v3013_v4 = vpop.f32.mrf.mxu0 }
 0x4e4   :  { %v1745_v21 = vmax.f32 %v3012_v6, 0.0 }
 0x4e5   :  { %v3014_v12 = vpop.f32.mrf.mxu0 }
 0x4e6   :  { %v1768_v25 = vpack.c.bf16 %v1745_v21, %v1744_v13  ;;  %v3015_v37 = vadd.f32 %v3014_v12, %v3013_v4 }
 0x4e7   :  { %v3016_v26 = vpop.f32.mrf.mxu0 }
 0x4e8   :  { %3343 = vmatprep.mubr.bf16.mxu1 %v1768_v25  ;;  %v1746_v27 = vmax.f32 %v3015_v37, 0.0 }
 0x4e9   :  { %v3017_v40 = vpop.f32.mrf.mxu0 }
 0x4ea   :  { %v3018_v14 = vadd.f32 %v3017_v40, %v3016_v26 }
 0x4eb   :  { %v3019_v28 = vpop.f32.mrf.mxu0 }
 0x4ec   :  { %v1747_v43 = vmax.f32 %v3018_v14, 0.0 }
 0x4ed   :  { %v3020_v52 = vpop.f32.mrf.mxu0 }
 0x4ee   :  { %v1769_v20 = vpack.c.bf16 %v1747_v43, %v1746_v27  ;;  %v3021_v49 = vadd.f32 %v3020_v52, %v3019_v28 }
 0x4ef   :  { %v3022_v36 = vpop.f32.mrf.mxu0 }
 0x4f0   :  { %3344 = vmatmul.mubr.bf16.gmra.mxu1 %v1769_v20  ;;  %v1748_v55 = vmax.f32 %v3021_v49, 0.0 }
 0x4f1   :  { %v3023_v62 = vpop.f32.mrf.mxu0 }
 0x4f2   :  { %v3024_v53 = vadd.f32 %v3023_v62, %v3022_v36 }
 0x4f3   :  { %v3025_v63 = vpop.f32.mrf.mxu0 }
 0x4f4   :  { %v1749_v45 = vmax.f32 %v3024_v53, 0.0 }
 0x4f5   :  { %v3026_v60 = vpop.f32.mrf.mxu0 }
 0x4f6   :  { %v1770_v61 = vpack.c.bf16 %v1749_v45, %v1748_v55  ;;  %v3027_v10 = vadd.f32 %v3026_v60, %v3025_v63 }
 0x4f7   :  { %v3028_v9 = vpop.f32.mrf.mxu0 }
 0x4f8   :  { %3347 = vmatprep.mubr.bf16.mxu1 %v1770_v61  ;;  %v1750_v58 = vmax.f32 %v3027_v10, 0.0 }
 0x4f9   :  { %v3029_v54 = vpop.f32.mrf.mxu0 }
 0x4fa   :  { %v3030_v7 = vadd.f32 %v3029_v54, %v3028_v9 }
 0x4fb   :  { %v3031_v48 = vpop.f32.mrf.mxu0 }
 0x4fc   :  { %v1751_v6 = vmax.f32 %v3030_v7, 0.0 }
 0x4fd   :  { %v3032_v4 = vpop.f32.mrf.mxu0 }
 0x4fe   :  { %v1771_v13 = vpack.c.bf16 %v1751_v6, %v1750_v58  ;;  %v3033_v12 = vadd.f32 %v3032_v4, %v3031_v48 }
 0x4ff   :  { %v3034_v21 = vpop.f32.mrf.mxu0 }
 0x500   :  { %3348 = vmatmul.mubr.bf16.gmra.mxu1 %v1771_v13  ;;  %v1752_v40 = vmax.f32 %v3033_v12, 0.0 }
 0x501   :  { %v3035_v25 = vpop.f32.mrf.mxu0 }
 0x502   :  { %v3036_v26 = vadd.f32 %v3035_v25, %v3034_v21 }
 0x503   :  { %v3037_v37 = vpop.f32.mrf.mxu0 }
 0x504   :  { %v1753_v14 = vmax.f32 %v3036_v26, 0.0 }
 0x505   :  { %v3038_v28 = vpop.f32.mrf.mxu0 }
 0x506   :  { %v1772_v27 = vpack.c.bf16 %v1753_v14, %v1752_v40  ;;  %v3039_v52 = vadd.f32 %v3038_v28, %v3037_v37 }
 0x507   :  { %v3040_v43 = vpop.f32.mrf.mxu0 }
 0x508   :  { %3351 = vmatprep.mubr.bf16.mxu1 %v1772_v27  ;;  %v1754_v62 = vmax.f32 %v3039_v52, 0.0 }
 0x509   :  { %v3041_v20 = vpop.f32.mrf.mxu0 }
 0x50a   :  { %v3042_v36 = vadd.f32 %v3041_v20, %v3040_v43 }
 0x50b   :  { %v3043_v49 = vpop.f32.mrf.mxu0 }
 0x50c   :  { %v1755_v53 = vmax.f32 %v3042_v36, 0.0 }
 0x50d   :  { %v3044_v63 = vpop.f32.mrf.mxu0 }
 0x50e   :  { %v1773_v55 = vpack.c.bf16 %v1755_v53, %v1754_v62  ;;  %v3045_v60 = vadd.f32 %v3044_v63, %v3043_v49 }
 0x50f   :  { %v3046_v45 = vpop.f32.mrf.mxu0 }
 0x510   :  { %3352 = vmatmul.mubr.bf16.gmra.mxu1 %v1773_v55  ;;  %v1756_v54 = vmax.f32 %v3045_v60, 0.0 }
 0x511   :  { %v3047_v61 = vpop.f32.mrf.mxu0 }
 0x512   :  { %v3048_v9 = vadd.f32 %v3047_v61, %v3046_v45 }
 0x513   :  { %v3049_v10 = vpop.f32.mrf.mxu0 }
 0x514   :  { %v1757_v7 = vmax.f32 %v3048_v9, 0.0 }
 0x515   :  { %v3050_v48 = vpop.f32.mrf.mxu0 }
 0x516   :  { %v1774_v58 = vpack.c.bf16 %v1757_v7, %v1756_v54  ;;  %v3051_v4 = vadd.f32 %v3050_v48, %v3049_v10 }
 0x517   :  { %v3052_v6 = vpop.f32.mrf.mxu0 }
 0x518   :  { %3355 = vmatprep.mubr.bf16.mxu1 %v1774_v58  ;;  %v1758_v12 = vmax.f32 %v3051_v4, 0.0 }
 0x519   :  { %v3053_v13 = vpop.f32.mrf.mxu0 }
 0x51a   :  { %v3054_v21 = vadd.f32 %v3053_v13, %v3052_v6 }
 0x51c   :  { %v1759_v25 = vmax.f32 %v3054_v21, 0.0 }
 0x51e   :  { %v1775_v26 = vpack.c.bf16 %v1759_v25, %v1758_v12 }
 0x520   :  { %3356 = vmatmul.mubr.bf16.gmra.mxu1 %v1775_v26 }
 0x521   :  { %2049 = vmatprep.mubr.bf16.mxu1 %v4104_v47 }
 0x570   :  { %v3329_v37 = vpop.f32.mrf.mxu1 }
 0x572   :  { %v1874_v40 = vpop.f32.mrf.mxu1 }
 0x574   :  { %v3330_v14 = vpop.f32.mrf.mxu1 }
 0x575   :  { %v2002_v28 = vpack.c.bf16 %v3330_v14, %v3329_v37 }
 0x576   :  { %v1877_v27 = vpop.f32.mrf.mxu1 }
 0x577   :  { %v2001_v43 = vpack.c.bf16 %v1877_v27, %v1874_v40 }
 0x580   :  { %v3333_v52 = vpop.f32.mrf.mxu1 }
 0x582   :  { %v1890_v20 = vpop.f32.mrf.mxu1 }
 0x584   :  { %v3334_v36 = vpop.f32.mrf.mxu1 }
 0x585   :  { %v2004_v49 = vpack.c.bf16 %v3334_v36, %v3333_v52 }
 0x586   :  { %v1893_v62 = vpop.f32.mrf.mxu1 }
 0x587   :  { %v2003_v53 = vpack.c.bf16 %v1893_v62, %v1890_v20 }
 0x590   :  { %v3337_v63 = vpop.f32.mrf.mxu1 }
 0x592   :  { %v1906_v55 = vpop.f32.mrf.mxu1 }
 0x594   :  { %v3338_v45 = vpop.f32.mrf.mxu1 }
 0x595   :  { %v2006_v35 = vpack.c.bf16 %v3338_v45, %v3337_v63  ;;  %v3536_v45 = vld [vmem:[#allocation13 + $0x8] sm:$0xff]  }
 0x596   :  { %v1909_v60 = vpop.f32.mrf.mxu1 }
 0x597   :  { %v2005_v51 = vpack.c.bf16 %v1909_v60, %v1906_v55  ;;  %v3537_v60 = vld [vmem:[#allocation13] sm:$0xff]  }
 0x5a0   :  { %v3341_v61 = vpop.f32.mrf.mxu1 }
 0x5a2   :  { %v1922_v9 = vpop.f32.mrf.mxu1 }
 0x5a4   :  { %v3342_v10 = vpop.f32.mrf.mxu1 }
 0x5a5   :  { %v2008_v20 = vpack.c.bf16 %v3342_v10, %v3341_v61 }
 0x5a6   :  { %v1925_v47 = vpop.f32.mrf.mxu1 }
 0x5a7   :  { %v2007_v56 = vpack.c.bf16 %v1925_v47, %v1922_v9 }
 0x5b0   :  { %v3345_v54 = vpop.f32.mrf.mxu1 }
 0x5b2   :  { %v1938_v7 = vpop.f32.mrf.mxu1 }
 0x5b4   :  { %v3346_v48 = vpop.f32.mrf.mxu1 }
 0x5b5   :  { %v2010_v61 = vpack.c.bf16 %v3346_v48, %v3345_v54 }
 0x5b6   :  { %v1941_v58 = vpop.f32.mrf.mxu1 }
 0x5b7   :  { %v2009_v10 = vpack.c.bf16 %v1941_v58, %v1938_v7 }
 0x5c0   :  { %v3349_v6 = vpop.f32.mrf.mxu1 }
 0x5c2   :  { %v1954_v4 = vpop.f32.mrf.mxu1 }
 0x5c4   :  { %v3350_v13 = vpop.f32.mrf.mxu1 }
 0x5c5   :  { %v2012_v50 = vpack.c.bf16 %v3350_v13, %v3349_v6 }
 0x5c6   :  { %v1957_v21 = vpop.f32.mrf.mxu1 }
 0x5c7   :  { %v2011_v46 = vpack.c.bf16 %v1957_v21, %v1954_v4 }
 0x5d0   :  { %v3353_v12 = vpop.f32.mrf.mxu1 }
 0x5d2   :  { %v1970_v25 = vpop.f32.mrf.mxu1 }
 0x5d4   :  { %v3354_v26 = vpop.f32.mrf.mxu1 }
 0x5d5   :  { %v2014_v0 = vpack.c.bf16 %v3354_v26, %v3353_v12 }
 0x5d6   :  { %v1973_v37 = vpop.f32.mrf.mxu1 }
 0x5d7   :  { %v2013_v39 = vpack.c.bf16 %v1973_v37, %v1970_v25 }
 0x5e0   :  { %v3357_v40 = vpop.f32.mrf.mxu1 }
 0x5e2   :  { %v1986_v14 = vpop.f32.mrf.mxu1 }
 0x5e4   :  { %v3358_v27 = vpop.f32.mrf.mxu1 }
 0x5e5   :  { %v2016_v52 = vpack.c.bf16 %v3358_v27, %v3357_v40 }
 0x5e6   :  { %v1989_v36 = vpop.f32.mrf.mxu1 }
 0x5e7   :  { %3079 = vmatprep.subr.bf16.mxu1 %v2016_v52  ;;  %v2015_v62 = vpack.c.bf16 %v1989_v36, %v1986_v14 }
 0x5e8   :  { %3080 = vmatpush3.bf16.msra.mxu1 %v2008_v20 }
 0x5e9   :  { %3081 = vmatprep.subr.bf16.mxu1 %v2015_v62 }
 0x5ec   :  { %3082 = vmatpush3.bf16.msra.mxu1 %v2007_v56  ;;  %v4638_v56 = vld [vmem:[#allocation27_spill] sm:$0xff] }
 0x5ed   :  { %3083 = vmatprep.subr.bf16.mxu1 %v2014_v0  ;;  %v4637_v0 = vld [vmem:[#allocation26_spill] sm:$0xff] }
 0x5f0   :  { %3084 = vmatpush3.bf16.msra.mxu1 %v2006_v35 }
 0x5f1   :  { %3085 = vmatprep.subr.bf16.mxu1 %v2013_v39 }
 0x5f4   :  { %3086 = vmatpush3.bf16.msra.mxu1 %v2005_v51  ;;  %v3533_v51 = vld [vmem:[#allocation13 + $0x20] sm:$0xff]  }
 0x5f5   :  { %3087 = vmatprep.subr.bf16.mxu1 %v2012_v50 }
 0x5f8   :  { %3088 = vmatpush3.bf16.msra.mxu1 %v2004_v49 }
 0x5f9   :  { %3089 = vmatprep.subr.bf16.mxu1 %v2011_v46 }
 0x5fc   :  { %3090 = vmatpush3.bf16.msra.mxu1 %v2003_v53  ;;  %v3535_v53 = vld [vmem:[#allocation13 + $0x10] sm:$0xff]  }
 0x5fd   :  { %3091 = vmatprep.subr.bf16.mxu1 %v2010_v61 }
 0x600   :  { %3092 = vmatpush3.bf16.msra.mxu1 %v2002_v28  ;;  %v3534_v28 = vld [vmem:[#allocation13 + $0x18] sm:$0xff]  }
 0x601   :  { %3093 = vmatprep.subr.bf16.mxu1 %v2009_v10 }
 0x604   :  { %3094 = vmatpush3.bf16.msra.mxu1 %v2001_v43 }
 0x607   :  { %2050 = vmatmul.mubr.bf16.vlgmr.msra.gmra.mxu1 %v4110_v2  ;;  %v4639_v2 = vld [vmem:[#allocation28_spill] sm:$0xff] }
 0x608   :  { %2057 = vmatprep.mubr.bf16.mxu1 %v4112_v15  ;;  %v4640_v15 = vld [vmem:[#allocation29_spill] sm:$0xff] }
 0x60f   :  { %2058 = vmatmul.mubr.bf16.gmra.mxu1 %v4116_v16  ;;  %v4641_v16 = vld [vmem:[#allocation30_spill] sm:$0xff] }
 0x610   :  { %2065 = vmatprep.mubr.bf16.mxu1 %v4118_v19 }
 0x617   :  { %2066 = vmatmul.mubr.bf16.gmra.mxu1 %v4122_v22 }
 0x618   :  { %2073 = vmatprep.mubr.bf16.mxu1 %v4124_v44 }
 0x61f   :  { %2074 = vmatmul.mubr.bf16.gmra.mxu1 %v4128_v57 }
 0x620   :  { %2081 = vmatprep.mubr.bf16.mxu1 %v4130_v1 }
 0x627   :  { %2082 = vmatmul.mubr.bf16.gmra.mxu1 %v4134_v17 }
 0x628   :  { %2089 = vmatprep.mubr.bf16.mxu1 %v4136_v3 }
 0x62f   :  { %2090 = vmatmul.mubr.bf16.gmra.mxu1 %v4140_v29 }
 0x630   :  { %2097 = vmatprep.mubr.bf16.mxu1 %v4142_v59 }
 0x637   :  { %2098 = vmatmul.mubr.bf16.gmra.mxu1 %v4146_v18 }
 0x638   :  { %2105 = vmatprep.mubr.bf16.mxu1 %v4148_v8 }
 0x63f   :  { %2106 = vmatmul.mubr.bf16.gmra.mxu1 %v4152_v23 }
 0x640   :  { %2113 = vmatprep.mubr.bf16.mxu1 %v4154_v5 }
 0x647   :  { %2114 = vmatmul.mubr.bf16.gmra.mxu1 %v4158_v24 }
 0x648   :  { %2121 = vmatprep.mubr.bf16.mxu1 %v4160_v30 }
 0x64f   :  { %2122 = vmatmul.mubr.bf16.gmra.mxu1 %v4164_v38 }
 0x650   :  { %2129 = vmatprep.mubr.bf16.mxu1 %v4166_v32  ;;  %v3530_v32 = vld [vmem:[#allocation13 + $0x38] sm:$0xff]  }
 0x651   :  { %3359 = vmatprep.subr.bf16.mxu0 %v3530_v32 }
 0x652   :  { %3360 = vmatpush3.bf16.msra.mxu0 %v3530_v32 }
 0x657   :  { %2130 = vmatmul.mubr.bf16.gmra.mxu1 %v4170_v31 }
 0x658   :  { %2137 = vmatprep.mubr.bf16.mxu1 %v4172_v11 }
 0x65f   :  { %2138 = vmatmul.mubr.bf16.gmra.mxu1 %v4176_v41  ;;  %v3531_v41 = vld [vmem:[#allocation13 + $0x30] sm:$0xff]  }
 0x660   :  { %2145 = vmatprep.mubr.bf16.mxu1 %v4178_v34  ;;  %3361 = vmatprep.subr.bf16.mxu0 %v3531_v41 }
 0x661   :  { %3362 = vmatpush3.bf16.msra.mxu0 %v3531_v41 }
 0x667   :  { %2146 = vmatmul.mubr.bf16.gmra.mxu1 %v4182_v42 }
 0x668   :  { %2153 = vmatprep.mubr.bf16.mxu1 %v4184_v33  ;;  %v3532_v33 = vld [vmem:[#allocation13 + $0x28] sm:$0xff]  }
 0x669   :  { %3363 = vmatprep.subr.bf16.mxu0 %v3532_v33 }
 0x66a   :  { %3364 = vmatpush3.bf16.msra.mxu0 %v3532_v33 }
 0x66b   :  { %3365 = vmatprep.subr.bf16.mxu0 %v3533_v51 }
 0x66e   :  { %3366 = vmatpush3.bf16.msra.mxu0 %v3533_v51 }
 0x66f   :  { %2154 = vmatmul.mubr.bf16.gmra.mxu1 %v4637_v0  ;;  %3367 = vmatprep.subr.bf16.mxu0 %v3534_v28 }
 0x670   :  { %2161 = vmatprep.mubr.bf16.mxu1 %v4638_v56 }
 0x672   :  { %3368 = vmatpush3.bf16.msra.mxu0 %v3534_v28 }
 0x673   :  { %3369 = vmatprep.subr.bf16.mxu0 %v3535_v53 }
 0x676   :  { %3370 = vmatpush3.bf16.msra.mxu0 %v3535_v53 }
 0x677   :  { %2162 = vmatmul.mubr.bf16.gmra.mxu1 %v4639_v2  ;;  %3371 = vmatprep.subr.bf16.mxu0 %v3536_v45 }
 0x678   :  { %2169 = vmatprep.mubr.bf16.mxu1 %v4640_v15 }
 0x67a   :  { %3372 = vmatpush3.bf16.msra.mxu0 %v3536_v45 }
 0x67b   :  { %3373 = vmatprep.subr.bf16.mxu0 %v3537_v60 }
 0x67e   :  { %3374 = vmatpush3.bf16.msra.mxu0 %v3537_v60 }
 0x67f   :  { %2170 = vmatmul.mubr.bf16.gmra.mxu1 %v4641_v16 }
 0x6c7   :  { %v3095_v19 = vpop.f32.mrf.mxu1 }
 0x6c9   :  { %v3096_v22 = vpop.f32.mrf.mxu1 }
 0x6ca   :  { %v4235_v44 = vadd.f32 %v3096_v22, %v3095_v19 }
 0x6cb   :  { %v3098_v57 = vpop.f32.mrf.mxu1 }
 0x6cc   :  { %v2216_v26 = vmul.f32 %v4235_v44, %v4235_v44 }
 0x6cd   :  { %v3099_v1 = vpop.f32.mrf.mxu1 }
 0x6ce   :  { %v4277_v58 = vadd.f32 %v3099_v1, %v3098_v57 }
 0x6cf   :  { %v3101_v17 = vpop.f32.mrf.mxu1 }
 0x6d0   :  { %v2217_v21 = vmul.f32 %v4277_v58, %v4277_v58  ;;  %v2178_v37 = vadd.f32 %v4277_v58, %v4235_v44 }
 0x6d1   :  { %v3102_v3 = vpop.f32.mrf.mxu1 }
 0x6d2   :  { %v4281_v4 = vadd.f32 %v3102_v3, %v3101_v17  ;;  %v2248_v52 = vadd.f32 %v2217_v21, %v2216_v26 }
 0x6d3   :  { %v3104_v29 = vpop.f32.mrf.mxu1 }
 0x6d4   :  { %v2218_v40 = vmul.f32 %v4281_v4, %v4281_v4  ;;  %v2179_v20 = vadd.f32 %v4281_v4, %v2178_v37 }
 0x6d5   :  { %v3105_v59 = vpop.f32.mrf.mxu1 }
 0x6d6   :  { %v4287_v12 = vadd.f32 %v3105_v59, %v3104_v29  ;;  %v2249_v10 = vadd.f32 %v2248_v52, %v2218_v40 }
 0x6d7   :  { %v3107_v18 = vpop.f32.mrf.mxu1 }
 0x6d8   :  { %v2219_v36 = vmul.f32 %v4287_v12, %v4287_v12  ;;  %v2180_v0 = vadd.f32 %v4287_v12, %v2179_v20 }
 0x6d9   :  { %v3108_v8 = vpop.f32.mrf.mxu1 }
 0x6da   :  { %v4297_v14 = vadd.f32 %v3108_v8, %v3107_v18  ;;  %v2250_v16 = vadd.f32 %v2249_v10, %v2219_v36 }
 0x6db   :  { %v3110_v23 = vpop.f32.mrf.mxu1 }
 0x6dc   :  { %v2220_v56 = vmul.f32 %v4297_v14, %v4297_v14  ;;  %v2181_v19 = vadd.f32 %v4297_v14, %v2180_v0 }
 0x6dd   :  { %v3111_v5 = vpop.f32.mrf.mxu1 }
 0x6de   :  { %v4304_v62 = vadd.f32 %v3111_v5, %v3110_v23  ;;  %v2251_v17 = vadd.f32 %v2250_v16, %v2220_v56 }
 0x6df   :  { %v4237_v24 = vpop.f32.mrf.mxu1 }
 0x6e0   :  { %v2221_v22 = vmul.f32 %v4304_v62, %v4304_v62  ;;  %v2182_v3 = vadd.f32 %v4304_v62, %v2181_v19 }
 0x6e1   :  { %v4239_v30 = vpop.f32.mrf.mxu1 }
 0x6e2   :  { %v4313_v2 = vadd.f32 %v4239_v30, %v4237_v24  ;;  %v2252_v8 = vadd.f32 %v2251_v17, %v2221_v22 }
 0x6e3   :  { %v4241_v38 = vpop.f32.mrf.mxu1 }
 0x6e4   :  { %v2222_v29 = vmul.f32 %v4313_v2, %v4313_v2  ;;  %v2183_v23 = vadd.f32 %v4313_v2, %v2182_v3 }
 0x6e5   :  { %v4243_v31 = vpop.f32.mrf.mxu1 }
 0x6e6   :  { %v4320_v57 = vadd.f32 %v4243_v31, %v4241_v38  ;;  %v2253_v38 = vadd.f32 %v2252_v8, %v2222_v29 }
 0x6e7   :  { %v4245_v11 = vpop.f32.mrf.mxu1 }
 0x6e8   :  { %v2223_v5 = vmul.f32 %v4320_v57, %v4320_v57  ;;  %v2184_v32 = vadd.f32 %v4320_v57, %v2183_v23 }
 0x6e9   :  { %v4247_v34 = vpop.f32.mrf.mxu1 }
 0x6ea   :  { %v4327_v59 = vadd.f32 %v4247_v34, %v4245_v11  ;;  %v2254_v34 = vadd.f32 %v2253_v38, %v2223_v5 }
 0x6eb   :  { %v4249_v42 = vpop.f32.mrf.mxu1 }
 0x6ec   :  { %v2224_v31 = vmul.f32 %v4327_v59, %v4327_v59  ;;  %v2185_v33 = vadd.f32 %v4327_v59, %v2184_v32 }
 0x6ed   :  { %v4251_v46 = vpop.f32.mrf.mxu1 }
 0x6ee   :  { %v4334_v24 = vadd.f32 %v4251_v46, %v4249_v42  ;;  %v2255_v28 = vadd.f32 %v2254_v34, %v2224_v31 }
 0x6ef   :  { %v4253_v50 = vpop.f32.mrf.mxu1 }
 0x6f0   :  { %v2225_v51 = vmul.f32 %v4334_v24, %v4334_v24  ;;  %v2186_v53 = vadd.f32 %v4334_v24, %v2185_v33 }
 0x6f1   :  { %v4255_v39 = vpop.f32.mrf.mxu1 }
 0x6f2   :  { %v4341_v11 = vadd.f32 %v4255_v39, %v4253_v50  ;;  %v2256_v60 = vadd.f32 %v2255_v28, %v2225_v51 }
 0x6f3   :  { %v4257_v35 = vpop.f32.mrf.mxu1 }
 0x6f4   :  { %v2226_v45 = vmul.f32 %v4341_v11, %v4341_v11  ;;  %v2187_v21 = vadd.f32 %v4341_v11, %v2186_v53 }
 0x6f5   :  { %v4259_v43 = vpop.f32.mrf.mxu1 }
 0x6f6   :  { %v4348_v42 = vadd.f32 %v4259_v43, %v4257_v35  ;;  %v2257_v37 = vadd.f32 %v2256_v60, %v2226_v45 }
 0x6f7   :  { %v4261_v49 = vpop.f32.mrf.mxu1 }
 0x6f8   :  { %v2227_v26 = vmul.f32 %v4348_v42, %v4348_v42  ;;  %v2188_v40 = vadd.f32 %v4348_v42, %v2187_v21 }
 0x6f9   :  { %v4263_v63 = vpop.f32.mrf.mxu1 }
 0x6fa   :  { %v4355_v50 = vadd.f32 %v4263_v63, %v4261_v49  ;;  %v2258_v20 = vadd.f32 %v2257_v37, %v2227_v26 }
 0x6fb   :  { %v4265_v55 = vpop.f32.mrf.mxu1 }
 0x6fc   :  { %v2228_v52 = vmul.f32 %v4355_v50, %v4355_v50  ;;  %v2189_v36 = vadd.f32 %v4355_v50, %v2188_v40 }
 0x6fd   :  { %v4267_v9 = vpop.f32.mrf.mxu1 }
 0x6fe   :  { %v4362_v35 = vadd.f32 %v4267_v9, %v4265_v55  ;;  %v2259_v0 = vadd.f32 %v2258_v20, %v2228_v52 }
 0x6ff   :  { %v4269_v47 = vpop.f32.mrf.mxu1 }
 0x700   :  { %v2229_v10 = vmul.f32 %v4362_v35, %v4362_v35  ;;  %v2190_v56 = vadd.f32 %v4362_v35, %v2189_v36 }
 0x701   :  { %v4271_v54 = vpop.f32.mrf.mxu1 }
 0x702   :  { %v4369_v49 = vadd.f32 %v4271_v54, %v4269_v47  ;;  %v2260_v19 = vadd.f32 %v2259_v0, %v2229_v10 }
 0x703   :  { %v4273_v7 = vpop.f32.mrf.mxu1 }
 0x704   :  { %v2230_v16 = vmul.f32 %v4369_v49, %v4369_v49  ;;  %v2191_v22 = vadd.f32 %v4369_v49, %v2190_v56 }
 0x705   :  { %v4275_v48 = vpop.f32.mrf.mxu1 }
 0x706   :  { %v4376_v55 = vadd.f32 %v4275_v48, %v4273_v7  ;;  %v2261_v3 = vadd.f32 %v2260_v19, %v2230_v16 }
 0x707   :  { %v4279_v6 = vpop.f32.mrf.mxu1 }
 0x708   :  { %v2231_v17 = vmul.f32 %v4376_v55, %v4376_v55  ;;  %v2192_v29 = vadd.f32 %v4376_v55, %v2191_v22 }
 0x709   :  { %v4283_v13 = vpop.f32.mrf.mxu1 }
 0x70a   :  { %v4383_v47 = vadd.f32 %v4283_v13, %v4279_v6  ;;  %v2262_v23 = vadd.f32 %v2261_v3, %v2231_v17 }
 0x70b   :  { %v4289_v25 = vpop.f32.mrf.mxu1 }
 0x70c   :  { %v2232_v8 = vmul.f32 %v4383_v47, %v4383_v47  ;;  %v2193_v5 = vadd.f32 %v4383_v47, %v2192_v29 }
 0x70d   :  { %v4299_v27 = vpop.f32.mrf.mxu1 }
 0x70e   :  { %v4390_v7 = vadd.f32 %v4299_v27, %v4289_v25  ;;  %v2263_v27 = vadd.f32 %v2262_v23, %v2232_v8 }
 0x70f   :  { %v4306_v61 = vpop.f32.mrf.mxu1 }
 0x710   :  { %v2233_v38 = vmul.f32 %v4390_v7, %v4390_v7  ;;  %v2194_v31 = vadd.f32 %v4390_v7, %v2193_v5 }
 0x711   :  { %v3150_v15 = vpop.f32.mrf.mxu1 }
 0x712   :  { %v4396_v6 = vadd.f32 %v3150_v15, %v4306_v61  ;;  %v2264_v15 = vadd.f32 %v2263_v27, %v2233_v38 }
 0x713   :  { %v3152_v1 = vpop.f32.mrf.mxu1 }
 0x714   :  { %v2234_v34 = vmul.f32 %v4396_v6, %v4396_v6  ;;  %v2195_v51 = vadd.f32 %v4396_v6, %v2194_v31 }
 0x715   :  { %v3153_v18 = vpop.f32.mrf.mxu1 }
 0x716   :  { %v4401_v32 = vadd.f32 %v3153_v18, %v3152_v1  ;;  %v2265_v18 = vadd.f32 %v2264_v15, %v2234_v34 }
 0x717   :  { %v3155_v30 = vpop.f32.mrf.mxu1 }
 0x718   :  { %v2235_v28 = vmul.f32 %v4401_v32, %v4401_v32  ;;  %v2196_v45 = vadd.f32 %v4401_v32, %v2195_v51 }
 0x719   :  { %v3156_v41 = vpop.f32.mrf.mxu1 }
 0x71a   :  { %v4406_v33 = vadd.f32 %v3156_v41, %v3155_v30  ;;  %v2266_v41 = vadd.f32 %v2265_v18, %v2235_v28 }
 0x71b   :  { %v3158_v46 = vpop.f32.mrf.mxu1 }
 0x71c   :  { %v2236_v60 = vmul.f32 %v4406_v33, %v4406_v33  ;;  %v2197_v26 = vadd.f32 %v4406_v33, %v2196_v45 }
 0x71d   :  { %v3159_v39 = vpop.f32.mrf.mxu1 }
 0x71e   :  { %v4411_v53 = vadd.f32 %v3159_v39, %v3158_v46  ;;  %v2267_v39 = vadd.f32 %v2266_v41, %v2236_v60 }
 0x71f   :  { %v3161_v43 = vpop.f32.mrf.mxu1 }
 0x720   :  { %v2237_v37 = vmul.f32 %v4411_v53, %v4411_v53  ;;  %v2198_v52 = vadd.f32 %v4411_v53, %v2197_v26 }
 0x721   :  { %v3162_v63 = vpop.f32.mrf.mxu1 }
 0x722   :  { %v4416_v21 = vadd.f32 %v3162_v63, %v3161_v43  ;;  %v2268_v63 = vadd.f32 %v2267_v39, %v2237_v37 }
 0x723   :  { %v3164_v9 = vpop.f32.mrf.mxu1 }
 0x724   :  { %v2238_v20 = vmul.f32 %v4416_v21, %v4416_v21  ;;  %v2199_v10 = vadd.f32 %v4416_v21, %v2198_v52 }
 0x725   :  { %v3165_v54 = vpop.f32.mrf.mxu1 }
 0x726   :  { %v4421_v40 = vadd.f32 %v3165_v54, %v3164_v9  ;;  %v2269_v16 = vadd.f32 %v2268_v63, %v2238_v20 }
 0x727   :  { %v3167_v48 = vpop.f32.mrf.mxu1 }
 0x728   :  { %v2239_v0 = vmul.f32 %v4421_v40, %v4421_v40  ;;  %v2200_v54 = vadd.f32 %v4421_v40, %v2199_v10 }
 0x729   :  { %v3168_v13 = vpop.f32.mrf.mxu1 }
 0x72a   :  { %v4426_v36 = vadd.f32 %v3168_v13, %v3167_v48  ;;  %v2270_v48 = vadd.f32 %v2269_v16, %v2239_v0 }
 0x72b   :  { %v3170_v25 = vpop.f32.mrf.mxu1 }
 0x72c   :  { %v2240_v19 = vmul.f32 %v4426_v36, %v4426_v36  ;;  %v2201_v3 = vadd.f32 %v4426_v36, %v2200_v54 }
 0x72d   :  { %v3171_v61 = vpop.f32.mrf.mxu1 }
 0x72e   :  { %v4431_v56 = vadd.f32 %v3171_v61, %v3170_v25  ;;  %v2271_v23 = vadd.f32 %v2270_v48, %v2240_v19 }
 0x72f   :  { %v3173_v1 = vpop.f32.mrf.mxu1 }
 0x730   :  { %v2241_v29 = vmul.f32 %v4431_v56, %v4431_v56  ;;  %v2202_v5 = vadd.f32 %v4431_v56, %v2201_v3 }
 0x731   :  { %v3174_v30 = vpop.f32.mrf.mxu1 }
 0x732   :  { %v4436_v22 = vadd.f32 %v3174_v30, %v3173_v1  ;;  %v2272_v31 = vadd.f32 %v2271_v23, %v2241_v29 }
 0x733   :  { %v3176_v46 = vpop.f32.mrf.mxu1 }
 0x734   :  { %v2242_v38 = vmul.f32 %v4436_v22, %v4436_v22  ;;  %v2203_v34 = vadd.f32 %v4436_v22, %v2202_v5 }
 0x735   :  { %v3177_v43 = vpop.f32.mrf.mxu1 }
 0x736   :  { %v4441_v8 = vadd.f32 %v3177_v43, %v3176_v46  ;;  %v2273_v28 = vadd.f32 %v2272_v31, %v2242_v38 }
 0x737   :  { %v3179_v9 = vpop.f32.mrf.mxu1 }
 0x738   :  { %v2243_v61 = vmul.f32 %v4441_v8, %v4441_v8  ;;  %v2204_v1 = vadd.f32 %v4441_v8, %v2203_v34 }
 0x739   :  { %v3180_v17 = vpop.f32.mrf.mxu1 }
 0x73a   :  { %v4446_v25 = vadd.f32 %v3180_v17, %v3179_v9  ;;  %v2274_v60 = vadd.f32 %v2273_v28, %v2243_v61 }
 0x73b   :  { %v3182_v13 = vpop.f32.mrf.mxu1 }
 0x73c   :  { %v2244_v18 = vmul.f32 %v4446_v25, %v4446_v25  ;;  %v2205_v30 = vadd.f32 %v4446_v25, %v2204_v1 }
 0x73d   :  { %v3183_v27 = vpop.f32.mrf.mxu1 }
 0x73e   :  { %v4451_v15 = vadd.f32 %v3183_v27, %v3182_v13  ;;  %v2275_v46 = vadd.f32 %v2274_v60, %v2244_v18  ;;  %v4642_v60 = vld [vmem:[#allocation24_spill] sm:$0xff] }
 0x73f   :  { %v3185_v51 = vpop.f32.mrf.mxu1 }
 0x740   :  { %v2245_v41 = vmul.f32 %v4451_v15, %v4451_v15  ;;  %v2206_v39 = vadd.f32 %v4451_v15, %v2205_v30 }
 0x741   :  { %v3186_v45 = vpop.f32.mrf.mxu1 }
 0x742   :  { %v3187_v26 = vadd.f32 %v3186_v45, %v3185_v51  ;;  %v2276_v43 = vadd.f32 %v2275_v46, %v2245_v41 }
 0x743   :  { %v3188_v37 = vpop.f32.mrf.mxu1 }
 0x744   :  { %v2246_v52 = vmul.f32 %v3187_v26, %v3187_v26  ;;  %v2207_v63 = vadd.f32 %v3187_v26, %v2206_v39 }
 0x745   :  { %v3189_v20 = vpop.f32.mrf.mxu1 }
 0x746   :  { %v3190_v10 = vadd.f32 %v3189_v20, %v3188_v37  ;;  %v2277_v0 = vadd.f32 %v2276_v43, %v2246_v52  ;;  %v4643_v37 = vld [vmem:[#allocation25_spill] sm:$0xff] }
 0x747   :  { %v2293_v46 = vsub.s32 2, %v4643_v37  ;;  %v2334_v20 = vsub.s32 3, %v4643_v37 }
 0x748   :  { %v2208_v9 = vadd.f32 %v3190_v10, %v2207_v63  ;;  %v2247_v16 = vmul.f32 %v3190_v10, %v3190_v10 }
 0x74a   :  { %v2209_v54 = vrot.slane %v2208_v9, 4  ;;  %v2278_v19 = vadd.f32 %v2277_v0, %v2247_v16 }
 0x74c   :  { %v2210_v17 = vadd.f32 %v2209_v54, %v2208_v9  ;;  %v2279_v48 = vrot.slane %v2278_v19, 4 }
 0x74e   :  { %v2211_v3 = vrot.slane %v2210_v17, 2  ;;  %v2280_v29 = vadd.f32 %v2279_v48, %v2278_v19 }
 0x750   :  { %v2212_v13 = vadd.f32 %v2211_v3, %v2210_v17  ;;  %v2281_v23 = vrot.slane %v2280_v29, 2 }
 0x752   :  { %v2213_v5 = vrot.slane %v2212_v13, 1  ;;  %v2282_v38 = vadd.f32 %v2281_v23, %v2280_v29 }
 0x754   :  { %v2214_v27 = vadd.f32 %v2213_v5, %v2212_v13  ;;  %v2283_v31 = vrot.slane %v2282_v38, 1 }
 0x756   :  { %v2215_v34 = vmul.f32 0.0625, %v2214_v27  ;;  %v2284_v61 = vadd.f32 %v2283_v31, %v2282_v38 }
 0x758   :  { %v2285_v51 = vmul.f32 0.0625, %v2284_v61  ;;  %v2286_v28 = vmul.f32 %v2215_v34, %v2215_v34 }
 0x75a   :  { %v2287_v1 = vsub.f32 %v2285_v51, %v2286_v28 }
 0x75c   :  { %v2288_v18 = vadd.f32 1e-05, %v2287_v1 }
 0x75e   :  { %3540 = vrsqrt.f32 %v2288_v18 }
 0x76b   :  { %v3541_v45 = vpop.eup %3540 }
 0x76c   :  { %v2290_v30 = vmul.f32 %v3541_v45, %v4642_v60 }
 0x76e   :  { %v2327_v41 = vmul.f32 %v2290_v30, %v2215_v34  ;;  %v4464_v43 = vrot.slane %v2290_v30, %v2293_v46 }
 0x770   :  { %v2329_v39 = vrot.slane %v2327_v41, 7  ;;  %v2297_v0 = vmul.f32 %v4281_v4, %v4464_v43  ;;  %v2298_v9 = vmul.f32 %v4287_v12, %v4464_v43  ;;  %v2295_v19 = vmul.f32 %v4235_v44, %v4464_v43 }
 0x771   :  { %v2296_v17 = vmul.f32 %v4277_v58, %v4464_v43  ;;  %v2299_v48 = vmul.f32 %v4297_v14, %v4464_v43  ;;  %v2300_v3 = vmul.f32 %v4304_v62, %v4464_v43  ;;  %v2326_v23 = vmul.f32 %v3190_v10, %v4464_v43 }
 0x772   :  { %v2331_v52 = vsub.f32 %v4642_v60, %v2329_v39  ;;  %v2325_v44 = vmul.f32 %v3187_v26, %v4464_v43  ;;  %v2323_v62 = vmul.f32 %v4446_v25, %v4464_v43  ;;  %v2324_v27 = vmul.f32 %v4451_v15, %v4464_v43 }
 0x773   :  { %v2301_v10 = vmul.f32 %v4313_v2, %v4464_v43  ;;  %v2302_v26 = vmul.f32 %v4320_v57, %v4464_v43  ;;  %v2303_v34 = vmul.f32 %v4327_v59, %v4464_v43  ;;  %v2304_v61 = vmul.f32 %v4334_v24, %v4464_v43 }
 0x774   :  { %v4466_v63 = vrot.slane %v2331_v52, %v2334_v20  ;;  %v2305_v45 = vmul.f32 %v4341_v11, %v4464_v43  ;;  %v2306_v30 = vmul.f32 %v4348_v42, %v4464_v43  ;;  %v2307_v41 = vmul.f32 %v4355_v50, %v4464_v43 }
 0x775   :  { %v2308_v46 = vmul.f32 %v4362_v35, %v4464_v43  ;;  %v2309_v42 = vmul.f32 %v4369_v49, %v4464_v43  ;;  %v2310_v50 = vmul.f32 %v4376_v55, %v4464_v43  ;;  %v2311_v35 = vmul.f32 %v4383_v47, %v4464_v43 }
 0x776   :  { %v2338_v16 = vadd.f32 %v4466_v63, %v2297_v0  ;;  %v2339_v54 = vadd.f32 %v4466_v63, %v2298_v9  ;;  %v2336_v4 = vadd.f32 %v4466_v63, %v2295_v19  ;;  %v2337_v12 = vadd.f32 %v4466_v63, %v2296_v17 }
 0x777   :  { %v2340_v29 = vadd.f32 %v4466_v63, %v2299_v48  ;;  %v2341_v13 = vadd.f32 %v4466_v63, %v2300_v3  ;;  %v4489_v38 = vadd.f32 %v4466_v63, %v2326_v23  ;;  %v4492_v14 = vadd.f32 %v4466_v63, %v2325_v44 }
 0x778   :  { %v2369_v5 = vpack.c.bf16 %v2339_v54, %v2338_v16  ;;  %v2368_v58 = vpack.c.bf16 %v2337_v12, %v2336_v4  ;;  %v4507_v25 = vadd.f32 %v4466_v63, %v2323_v62  ;;  %v4510_v15 = vadd.f32 %v4466_v63, %v2324_v27 }
 0x779   :  { %v2370_v31 = vpack.c.bf16 %v2341_v13, %v2340_v29  ;;  %v2342_v51 = vadd.f32 %v4466_v63, %v2301_v10  ;;  %v2343_v2 = vadd.f32 %v4466_v63, %v2302_v26  ;;  %v2383_v57 = vpack.c.bf16 %v4489_v38, %v4492_v14 }
 0x77a   :  { %3375 = vmatprep.mubr.bf16.mxu0 %v2368_v58  ;;  %v2344_v28 = vadd.f32 %v4466_v63, %v2303_v34  ;;  %v2345_v59 = vadd.f32 %v4466_v63, %v2304_v61  ;;  %v2382_v24 = vpack.c.bf16 %v4510_v15, %v4507_v25  ;;  %v2346_v39 = vadd.f32 %v4466_v63, %v2305_v45 }
 0x77b   :  { %3376 = vmatmul.mubr.bf16.vlgmr.msra.gmra.mxu0 %v2369_v5  ;;  %v2371_v1 = vpack.c.bf16 %v2343_v2, %v2342_v51  ;;  %v2347_v52 = vadd.f32 %v4466_v63, %v2306_v30  ;;  %v2348_v20 = vadd.f32 %v4466_v63, %v2307_v41  ;;  %v2349_v0 = vadd.f32 %v4466_v63, %v2308_v46 }
 0x77c   :  { %3379 = vmatprep.mubr.bf16.mxu0 %v2370_v31  ;;  %v2372_v18 = vpack.c.bf16 %v2345_v59, %v2344_v28  ;;  %v2312_v16 = vmul.f32 %v4390_v7, %v4464_v43  ;;  %v2350_v54 = vadd.f32 %v4466_v63, %v2309_v42  ;;  %v2351_v19 = vadd.f32 %v4466_v63, %v2310_v50 }
 0x77d   :  { %v2373_v11 = vpack.c.bf16 %v2347_v52, %v2346_v39  ;;  %v2374_v9 = vpack.c.bf16 %v2349_v0, %v2348_v20  ;;  %v2352_v17 = vadd.f32 %v4466_v63, %v2311_v35  ;;  %v2313_v55 = vmul.f32 %v4396_v6, %v4464_v43 }
 0x77e   :  { %v2353_v48 = vadd.f32 %v4466_v63, %v2312_v16  ;;  %v2375_v49 = vpack.c.bf16 %v2351_v19, %v2350_v54  ;;  %v2314_v47 = vmul.f32 %v4401_v32, %v4464_v43  ;;  %v2315_v7 = vmul.f32 %v4406_v33, %v4464_v43 }
 0x77f   :  { %v2316_v4 = vmul.f32 %v4411_v53, %v4464_v43  ;;  %v2354_v12 = vadd.f32 %v4466_v63, %v2313_v55  ;;  %v2317_v32 = vmul.f32 %v4416_v21, %v4464_v43  ;;  %v2318_v33 = vmul.f32 %v4421_v40, %v4464_v43 }
 0x780   :  { %v2376_v3 = vpack.c.bf16 %v2353_v48, %v2352_v17  ;;  %v2355_v29 = vadd.f32 %v4466_v63, %v2314_v47  ;;  %v2356_v13 = vadd.f32 %v4466_v63, %v2315_v7  ;;  %v2319_v53 = vmul.f32 %v4426_v36, %v4464_v43 }
 0x781   :  { %v2357_v23 = vadd.f32 %v4466_v63, %v2316_v4  ;;  %v2320_v5 = vmul.f32 %v4431_v56, %v4464_v43  ;;  %v2358_v58 = vadd.f32 %v4466_v63, %v2317_v32  ;;  %v2359_v38 = vadd.f32 %v4466_v63, %v2318_v33 }
 0x782   :  { %v2377_v6 = vpack.c.bf16 %v2355_v29, %v2354_v12  ;;  %v2360_v14 = vadd.f32 %v4466_v63, %v2319_v53  ;;  %v2321_v40 = vmul.f32 %v4436_v22, %v4464_v43  ;;  %v2322_v36 = vmul.f32 %v4441_v8, %v4464_v43 }
 0x783   :  { %3380 = vmatmul.mubr.bf16.gmra.mxu0 %v2371_v1  ;;  %v2378_v44 = vpack.c.bf16 %v2357_v23, %v2356_v13  ;;  %v2361_v62 = vadd.f32 %v4466_v63, %v2320_v5  ;;  %v2379_v21 = vpack.c.bf16 %v2359_v38, %v2358_v58  ;;  %v2402_v26 = vsub.s32 4, %v4643_v37 }
 0x784   :  { %3383 = vmatprep.mubr.bf16.mxu0 %v2372_v18  ;;  %v2362_v56 = vadd.f32 %v4466_v63, %v2321_v40  ;;  %v2363_v31 = vadd.f32 %v4466_v63, %v2322_v36 }
 0x785   :  { %v2380_v27 = vpack.c.bf16 %v2361_v62, %v2360_v14  ;;  %v4576_v34 = vrot.slane %v4642_v60, %v2402_v26 }
 0x786   :  { %v2381_v10 = vpack.c.bf16 %v2363_v31, %v2362_v56 }
 0x78b   :  { %3384 = vmatmul.mubr.bf16.gmra.mxu0 %v2373_v11 }
 0x78c   :  { %3387 = vmatprep.mubr.bf16.mxu0 %v2374_v9 }
 0x793   :  { %3388 = vmatmul.mubr.bf16.gmra.mxu0 %v2375_v49 }
 0x794   :  { %3391 = vmatprep.mubr.bf16.mxu0 %v2376_v3 }
 0x79b   :  { %3392 = vmatmul.mubr.bf16.gmra.mxu0 %v2377_v6 }
 0x79c   :  { %3395 = vmatprep.mubr.bf16.mxu0 %v2378_v44 }
 0x7a3   :  { %3396 = vmatmul.mubr.bf16.gmra.mxu0 %v2379_v21 }
 0x7a4   :  { %3399 = vmatprep.mubr.bf16.mxu0 %v2380_v27 }
 0x7ab   :  { %3400 = vmatmul.mubr.bf16.gmra.mxu0 %v2381_v10 }
 0x7ac   :  { %3403 = vmatprep.mubr.bf16.mxu0 %v2382_v24 }
 0x7b3   :  { %3404 = vmatmul.mubr.bf16.gmra.mxu0 %v2383_v57 }
 0x83b   :  { %v3377_v61 = vpop.f32.mrf.mxu0 }
 0x83c   :  { %v2495_v22 = vadd.f32 %v3377_v61, %v4576_v34 }
 0x83d   :  { %v2486_v25 = vpop.f32.mrf.mxu0 }
 0x83e   :  { %2615 = vst [vmem:[#allocation14 + $0x10] sm:$0xff] %v2495_v22  ;;  %v2487_v8 = vadd.f32 %v2486_v25, %v4576_v34 }
 0x83f   :  { %v3378_v43 = vpop.f32.mrf.mxu0 }
 0x840   :  { %2613 = vst [vmem:[#allocation14] sm:$0xff] %v2487_v8  ;;  %v2498_v63 = vadd.f32 %v3378_v43, %v4576_v34 }
 0x841   :  { %v2489_v15 = vpop.f32.mrf.mxu0 }
 0x842   :  { %2616 = vst [vmem:[#allocation14 + $0x18] sm:$0xff] %v2498_v63  ;;  %v2490_v51 = vadd.f32 %v2489_v15, %v4576_v34 }
 0x843   :  { %v3381_v2 = vpop.f32.mrf.mxu0 }
 0x844   :  { %2614 = vst [vmem:[#allocation14 + $0x8] sm:$0xff] %v2490_v51  ;;  %v2511_v60 = vadd.f32 %v3381_v2, %v4576_v34 }
 0x845   :  { %v2502_v37 = vpop.f32.mrf.mxu0 }
 0x846   :  { %2619 = vst [vmem:[#allocation14 + $0x30] sm:$0xff] %v2511_v60  ;;  %v2503_v57 = vadd.f32 %v2502_v37, %v4576_v34 }
 0x847   :  { %v3382_v28 = vpop.f32.mrf.mxu0 }
 0x848   :  { %2617 = vst [vmem:[#allocation14 + $0x20] sm:$0xff] %v2503_v57  ;;  %v2514_v59 = vadd.f32 %v3382_v28, %v4576_v34 }
 0x849   :  { %v2505_v24 = vpop.f32.mrf.mxu0 }
 0x84a   :  { %2620 = vst [vmem:[#allocation14 + $0x38] sm:$0xff] %v2514_v59  ;;  %v2506_v1 = vadd.f32 %v2505_v24, %v4576_v34 }
 0x84b   :  { %v3385_v18 = vpop.f32.mrf.mxu0 }
 0x84c   :  { %2618 = vst [vmem:[#allocation14 + $0x28] sm:$0xff] %v2506_v1  ;;  %v2527_v45 = vadd.f32 %v3385_v18, %v4576_v34 }
 0x84d   :  { %v2518_v30 = vpop.f32.mrf.mxu0 }
 0x84e   :  { %2623 = vst [vmem:[#allocation14 + $0x50] sm:$0xff] %v2527_v45  ;;  %v2519_v41 = vadd.f32 %v2518_v30, %v4576_v34 }
 0x84f   :  { %v3386_v46 = vpop.f32.mrf.mxu0 }
 0x850   :  { %2621 = vst [vmem:[#allocation14 + $0x40] sm:$0xff] %v2519_v41  ;;  %v2530_v39 = vadd.f32 %v3386_v46, %v4576_v34 }
 0x851   :  { %v2521_v52 = vpop.f32.mrf.mxu0 }
 0x852   :  { %2624 = vst [vmem:[#allocation14 + $0x58] sm:$0xff] %v2530_v39  ;;  %v2522_v20 = vadd.f32 %v2521_v52, %v4576_v34 }
 0x853   :  { %v3389_v0 = vpop.f32.mrf.mxu0 }
 0x854   :  { %2622 = vst [vmem:[#allocation14 + $0x48] sm:$0xff] %v2522_v20  ;;  %v2543_v11 = vadd.f32 %v3389_v0, %v4576_v34 }
 0x855   :  { %v2534_v9 = vpop.f32.mrf.mxu0 }
 0x856   :  { %2627 = vst [vmem:[#allocation14 + $0x70] sm:$0xff] %v2543_v11  ;;  %v2535_v42 = vadd.f32 %v2534_v9, %v4576_v34 }
 0x857   :  { %v3390_v50 = vpop.f32.mrf.mxu0 }
 0x858   :  { %2625 = vst [vmem:[#allocation14 + $0x60] sm:$0xff] %v2535_v42  ;;  %v2546_v35 = vadd.f32 %v3390_v50, %v4576_v34 }
 0x859   :  { %v2537_v16 = vpop.f32.mrf.mxu0 }
 0x85a   :  { %2628 = vst [vmem:[#allocation14 + $0x78] sm:$0xff] %v2546_v35  ;;  %v2538_v54 = vadd.f32 %v2537_v16, %v4576_v34 }
 0x85b   :  { %v3393_v19 = vpop.f32.mrf.mxu0 }
 0x85c   :  { %2626 = vst [vmem:[#allocation14 + $0x68] sm:$0xff] %v2538_v54  ;;  %v2559_v17 = vadd.f32 %v3393_v19, %v4576_v34 }
 0x85d   :  { %v2550_v48 = vpop.f32.mrf.mxu0 }
 0x85e   :  { %2631 = vst [vmem:[#allocation14 + $0x90] sm:$0xff] %v2559_v17  ;;  %v2551_v49 = vadd.f32 %v2550_v48, %v4576_v34 }
 0x85f   :  { %v3394_v3 = vpop.f32.mrf.mxu0 }
 0x860   :  { %2629 = vst [vmem:[#allocation14 + $0x80] sm:$0xff] %v2551_v49  ;;  %v2562_v55 = vadd.f32 %v3394_v3, %v4576_v34 }
 0x861   :  { %v2553_v47 = vpop.f32.mrf.mxu0 }
 0x862   :  { %2632 = vst [vmem:[#allocation14 + $0x98] sm:$0xff] %v2562_v55  ;;  %v2554_v7 = vadd.f32 %v2553_v47, %v4576_v34 }
 0x863   :  { %v3397_v4 = vpop.f32.mrf.mxu0 }
 0x864   :  { %2630 = vst [vmem:[#allocation14 + $0x88] sm:$0xff] %v2554_v7  ;;  %v2575_v12 = vadd.f32 %v3397_v4, %v4576_v34 }
 0x865   :  { %v2566_v29 = vpop.f32.mrf.mxu0 }
 0x866   :  { %2635 = vst [vmem:[#allocation14 + $0xb0] sm:$0xff] %v2575_v12  ;;  %v2567_v13 = vadd.f32 %v2566_v29, %v4576_v34 }
 0x867   :  { %v3398_v23 = vpop.f32.mrf.mxu0 }
 0x868   :  { %2633 = vst [vmem:[#allocation14 + $0xa0] sm:$0xff] %v2567_v13  ;;  %v2578_v6 = vadd.f32 %v3398_v23, %v4576_v34 }
 0x869   :  { %v2569_v44 = vpop.f32.mrf.mxu0 }
 0x86a   :  { %2636 = vst [vmem:[#allocation14 + $0xb8] sm:$0xff] %v2578_v6  ;;  %v2570_v32 = vadd.f32 %v2569_v44, %v4576_v34 }
 0x86b   :  { %v3401_v33 = vpop.f32.mrf.mxu0 }
 0x86c   :  { %2634 = vst [vmem:[#allocation14 + $0xa8] sm:$0xff] %v2570_v32  ;;  %v2591_v53 = vadd.f32 %v3401_v33, %v4576_v34 }
 0x86d   :  { %v2582_v5 = vpop.f32.mrf.mxu0 }
 0x86e   :  { %2639 = vst [vmem:[#allocation14 + $0xd0] sm:$0xff] %v2591_v53  ;;  %v2583_v58 = vadd.f32 %v2582_v5, %v4576_v34 }
 0x86f   :  { %v3402_v38 = vpop.f32.mrf.mxu0 }
 0x870   :  { %2637 = vst [vmem:[#allocation14 + $0xc0] sm:$0xff] %v2583_v58  ;;  %v2594_v14 = vadd.f32 %v3402_v38, %v4576_v34 }
 0x871   :  { %v2585_v62 = vpop.f32.mrf.mxu0 }
 0x872   :  { %2640 = vst [vmem:[#allocation14 + $0xd8] sm:$0xff] %v2594_v14  ;;  %v2586_v21 = vadd.f32 %v2585_v62, %v4576_v34 }
 0x873   :  { %v3405_v27 = vpop.f32.mrf.mxu0 }
 0x874   :  { %2638 = vst [vmem:[#allocation14 + $0xc8] sm:$0xff] %v2586_v21  ;;  %v2607_v40 = vadd.f32 %v3405_v27, %v4576_v34 }
 0x875   :  { %v2598_v36 = vpop.f32.mrf.mxu0 }
 0x876   :  { %2643 = vst [vmem:[#allocation14 + $0xf0] sm:$0xff] %v2607_v40  ;;  %v2599_v56 = vadd.f32 %v2598_v36, %v4576_v34 }
 0x877   :  { %v3406_v31 = vpop.f32.mrf.mxu0 }
 0x878   :  { %2641 = vst [vmem:[#allocation14 + $0xe0] sm:$0xff] %v2599_v56  ;;  %v2610_v10 = vadd.f32 %v3406_v31, %v4576_v34 }
 0x879   :  { %v2601_v26 = vpop.f32.mrf.mxu0 }
 0x87a   :  { %2644 = vst [vmem:[#allocation14 + $0xf8] sm:$0xff] %v2610_v10  ;;  %v2602_v61 = vadd.f32 %v2601_v26, %v4576_v34 }
 0x87c   :  { %2642 = vst [vmem:[#allocation14 + $0xe8] sm:$0xff] %v2602_v61 }
 0x87d   :  { %3673 = shalt.err (!%p3670_p6)
}
 0x87e   :  { %s3701_s8 = smov 128   ;;  %s3702_s9 = smov 8  }
 0x87f   :  { %2656 = dma.vmem_to_hbm [thread:$0]  %s2651_s6, 4096, %s4620_s7, [#allocation7], %s3701_s8, %s3701_s8, %s3702_s9  }
 0x880   :  { %3690 = dma.done.wait [#allocation7], 4096  }
 0x881   :  { %3691 = vsyncadd [#allocation7], 4294963200 }
 0x882   :  { %2660 = vsyncpa [#allocation6], 1 }
 0x883   :  { %2661 = vsyncpa [#allocation9], 1 }
 0x884   :  { %2662 = vsyncpa [#allocation12], 1 }
 0x885   :  { %2663 = vsyncpa [#allocation7], 1 }
 0x886   :  { %2664 = vsyncmov [#allocation4] }
 0x889   :  { %s2665_s12 = vpop.sfrf %2664 }
 0x88a   :  { %p2782_p7 = scmp.ne.s32.totalorder %s2665_s12, 0 }
 0x88c   :  { %2669 = shalt.err (%p2782_p7)  }

</bundles_post_ra>
